<compile_context>
chip_gen: v5e
topology: v5e:2x2
jax: 0.10.0
libtpu: 0.0.40
codegen_flags: <defaults>
</compile_context>

<pallas_src>
import jax
import jax.numpy as jnp
from jax.experimental import pallas as pl
from jax.experimental.pallas import tpu as pltpu


def lstm_kernel(ids_act_ref,   # SMEM (B, T) int32
                ids_res_ref,   # SMEM (B, T) int32
                emb_act_ref,   # VMEM (Va_p, E)  padded embedding table (act)
                emb_res_ref,   # VMEM (Vr_p, E)  padded embedding table (res)
                wih0a_ref,     # VMEM (E, 4E)  = W_ih0[:, :E].T
                wih0r_ref,     # VMEM (E, 4E)  = W_ih0[:, E:].T
                whh0_ref,      # VMEM (E, 4E)  = W_hh0.T
                b0_ref,        # VMEM (1, 4E)  = b_ih0 + b_hh0
                wih1_ref,      # VMEM (E, 4E)  = W_ih1.T
                whh1_ref,      # VMEM (E, 4E)  = W_hh1.T
                b1_ref,        # VMEM (1, 4E)  = b_ih1 + b_hh1
                wf_ref,        # VMEM (1, E)   final linear weight (row vector)
                bf_ref,        # VMEM (1, 1)   final linear bias
                out_ref,       # VMEM (Bp, 1)  sigmoid(logits)
                pa_ref,        # scratch VMEM (Va_p, 4E)  per-token proj (act) + b0
                pr_ref,        # scratch VMEM (Vr_p, 4E)  per-token proj (res)
                gx0_ref):      # scratch VMEM (T*Bp, 4E)  layer-0 input gates
    B, T = ids_act_ref.shape
    Bp = out_ref.shape[0]
    E = wf_ref.shape[1]
    G = 4 * E

    # ---- Stage 1 (off the recurrent chain): per-token input projections ----
    # gx0[b,t] = emb_act[id_a] @ Wih0_a + emb_res[id_r] @ Wih0_r + b0
    pa_ref[...] = (jnp.dot(emb_act_ref[...], wih0a_ref[...],
                           preferred_element_type=jnp.float32) + b0_ref[...])
    pr_ref[...] = jnp.dot(emb_res_ref[...], wih0r_ref[...],
                          preferred_element_type=jnp.float32)

    # Zero-fill so padded batch rows are deterministic (they are discarded).
    gx0_ref[...] = jnp.zeros_like(gx0_ref)

    # Gather the layer-0 input contribution for every (t, b) once, up front.
    for t in range(T):
        for b in range(B):
            ia = ids_act_ref[b, t]
            ir = ids_res_ref[b, t]
            row = pa_ref[pl.ds(ia, 1), :] + pr_ref[pl.ds(ir, 1), :]   # (1, 4E)
            gx0_ref[pl.ds(t * Bp + b, 1), :] = row

    # ---- Stage 2: constants hoisted out of the recurrence ----
    whh0 = whh0_ref[...]
    wih1 = wih1_ref[...]
    whh1 = whh1_ref[...]
    b1 = jnp.broadcast_to(b1_ref[...], (Bp, G))

    # Single-transcendental gate activation:
    #   g lanes  -> tanh(x)
    #   i/f/o    -> sigmoid(x) = 0.5*tanh(0.5*x) + 0.5   (exact identity)
    lane = jax.lax.broadcasted_iota(jnp.int32, (Bp, G), 1)
    is_g = jnp.logical_and(lane >= 2 * E, lane < 3 * E)
    gate_scale = jnp.where(is_g, 1.0, 0.5).astype(jnp.float32)
    gate_off = jnp.where(is_g, 0.0, 0.5).astype(jnp.float32)

    def activate(gates):
        th = jnp.tanh(gates * gate_scale)      # one EUP pass over the full vreg
        return th * gate_scale + gate_off

    def update(act, c):
        i = act[:, 0 * E:1 * E]
        f = act[:, 1 * E:2 * E]
        g = act[:, 2 * E:3 * E]
        o = act[:, 3 * E:4 * E]
        c_new = f * c + i * g
        h_new = o * jnp.tanh(c_new)
        return h_new, c_new

    zeros = jnp.zeros((Bp, E), jnp.float32)
    h0 = c0 = h1 = c1 = zeros

    # ---- Stage 3: fused 2-layer recurrence, fully unrolled (T static) ----
    for t in range(T):
        gx = gx0_ref[pl.ds(t * Bp, Bp), :]                         # static slice
        g0 = gx + jnp.dot(h0, whh0, preferred_element_type=jnp.float32)
        h0, c0 = update(activate(g0), c0)
        g1 = (jnp.dot(h0, wih1, preferred_element_type=jnp.float32)
              + jnp.dot(h1, whh1, preferred_element_type=jnp.float32) + b1)
        h1, c1 = update(activate(g1), c1)

    # Final Linear(E -> 1): VPU multiply + lane reduction (no N=1 MXU pass).
    logits = jnp.sum(h1 * wf_ref[...], axis=-1, keepdims=True) + bf_ref[...]
    out_ref[...] = jax.nn.sigmoid(logits)


def lstm_forward_pallas(ids_act, ids_res, emb_act_p, emb_res_p,
                        wih0a_t, wih0r_t, whh0_t, b0,
                        wih1_t, whh1_t, b1, wf, bf, *, batch_pad=8):
    """Single fused pallas_call for the full forward pass. Returns (B, 1)."""
    B, T = ids_act.shape
    E = wf.shape[1]
    Bp = max(batch_pad, ((B + 7) // 8) * 8)
    Va_p = emb_act_p.shape[0]
    Vr_p = emb_res_p.shape[0]

    smem = pl.BlockSpec(memory_space=pltpu.MemorySpace.SMEM)
    vmem = pl.BlockSpec(memory_space=pltpu.MemorySpace.VMEM)

    out = pl.pallas_call(
        lstm_kernel,
        out_shape=jax.ShapeDtypeStruct((Bp, 1), jnp.float32),
        in_specs=[smem, smem] + [vmem] * 11,
        out_specs=vmem,
        scratch_shapes=[
            pltpu.VMEM((Va_p, 4 * E), jnp.float32),
            pltpu.VMEM((Vr_p, 4 * E), jnp.float32),
            pltpu.VMEM((T * Bp, 4 * E), jnp.float32),
        ],
        compiler_params=pltpu.CompilerParams(
            vmem_limit_bytes=32 * 1024 * 1024),
    )(ids_act, ids_res, emb_act_p, emb_res_p,
      wih0a_t, wih0r_t, whh0_t, b0, wih1_t, whh1_t, b1, wf, bf)
    # Padded rows [B, Bp) hold garbage by construction; never expose them.
    return out[:B]


if __name__ == "__main__":
    # Module hyperparameters (small, consistent with the forward pass)
    vocab_size = (10, 12)
    embed_size = 32          # E (also LSTM hidden size)
    lstm_size = 2            # num LSTM layers (kernel implements 2)
    max_length = 8           # T
    B, T, E = 2, max_length, embed_size

    key = jax.random.PRNGKey(0)
    keys = jax.random.split(key, 16)

    # Deterministic parameter init (shapes follow nn.Embedding / nn.LSTM / nn.Linear)
    emb_act = jax.random.normal(keys[0], (vocab_size[0], E), jnp.float32)
    emb_res = jax.random.normal(keys[1], (vocab_size[1], E), jnp.float32)
    bound = 1.0 / float(jnp.sqrt(E))

    def unif(kk, shape):
        return jax.random.uniform(kk, shape, jnp.float32, -bound, bound)

    # LSTM layer 0 (input = 2E), layer 1 (input = E); PyTorch weight shapes
    w_ih0 = unif(keys[2], (4 * E, 2 * E))
    w_hh0 = unif(keys[3], (4 * E, E))
    b_ih0 = unif(keys[4], (4 * E,))
    b_hh0 = unif(keys[5], (4 * E,))
    w_ih1 = unif(keys[6], (4 * E, E))
    w_hh1 = unif(keys[7], (4 * E, E))
    b_ih1 = unif(keys[8], (4 * E,))
    b_hh1 = unif(keys[9], (4 * E,))
    w_fin = unif(keys[10], (1, E))
    b_fin = unif(keys[11], (1,))

    # Deterministic example inputs (token id sequences)
    x_act = jax.random.randint(keys[12], (B, T), 0, vocab_size[0]).astype(jnp.int32)
    x_res = jax.random.randint(keys[13], (B, T), 0, vocab_size[1]).astype(jnp.int32)

    # One-time parameter prep (done at init, not per call):
    #   * embedding tables padded to a sublane multiple (extra rows zero, never indexed)
    #   * W_ih0 split by input half and transposed; other weights transposed
    #   * biases combined (b_ih + b_hh)
    Va_p = ((vocab_size[0] + 7) // 8) * 8
    Vr_p = ((vocab_size[1] + 7) // 8) * 8
    emb_act_p = jnp.zeros((Va_p, E), jnp.float32).at[:vocab_size[0]].set(emb_act)
    emb_res_p = jnp.zeros((Vr_p, E), jnp.float32).at[:vocab_size[1]].set(emb_res)

    wih0a_t = w_ih0[:, :E].T      # (E, 4E)  input half acting on emb_act
    wih0r_t = w_ih0[:, E:].T      # (E, 4E)  input half acting on emb_res
    whh0_t = w_hh0.T              # (E, 4E)
    wih1_t = w_ih1.T              # (E, 4E)
    whh1_t = w_hh1.T              # (E, 4E)
    b0 = (b_ih0 + b_hh0)[None, :]
    b1 = (b_ih1 + b_hh1)[None, :]
    bf = b_fin[None, :]           # (1, 1)

    out = lstm_forward_pallas(
        x_act, x_res, emb_act_p, emb_res_p,
        wih0a_t, wih0r_t, whh0_t, b0, wih1_t, whh1_t, b1, w_fin, bf)
    out = jax.block_until_ready(out)

    # Pure-JAX reference for correctness
    def ref_forward():
        x_emb = jnp.concatenate([emb_act[x_act], emb_res[x_res]], axis=-1)

        def cell(xt, h, c, wih, whh, b):
            g = xt @ wih.T + h @ whh.T + b
            i, f, gg, o = jnp.split(g, 4, axis=-1)
            c = jax.nn.sigmoid(f) * c + jax.nn.sigmoid(i) * jnp.tanh(gg)
            h = jax.nn.sigmoid(o) * jnp.tanh(c)
            return h, c

        h0 = c0 = h1 = c1 = jnp.zeros((B, E), jnp.float32)
        for t in range(T):
            h0, c0 = cell(x_emb[:, t, :], h0, c0, w_ih0, w_hh0, b_ih0 + b_hh0)
            h1, c1 = cell(h0, h1, c1, w_ih1, w_hh1, b_ih1 + b_hh1)
        return jax.nn.sigmoid(h1 @ w_fin.T + b_fin)

    ref = jax.block_until_ready(ref_forward())
    assert out.shape == (B, 1)
    assert jnp.allclose(out, ref, atol=1e-5, rtol=1e-5), (out, ref)
    print("KERNEL_OK")
</pallas_src>

<mosaic_0001>
module attributes {stable_mosaic.version = 11 : i64} {
  func.func @lstm_kernel(%arg0: memref<2x8xi32, #tpu.memory_space<smem>>, %arg1: memref<2x8xi32, #tpu.memory_space<smem>>, %arg2: memref<16x32xf32, #tpu.memory_space<vmem>>, %arg3: memref<16x32xf32, #tpu.memory_space<vmem>>, %arg4: memref<32x128xf32, #tpu.memory_space<vmem>>, %arg5: memref<32x128xf32, #tpu.memory_space<vmem>>, %arg6: memref<32x128xf32, #tpu.memory_space<vmem>>, %arg7: memref<1x128xf32, #tpu.memory_space<vmem>>, %arg8: memref<32x128xf32, #tpu.memory_space<vmem>>, %arg9: memref<32x128xf32, #tpu.memory_space<vmem>>, %arg10: memref<1x128xf32, #tpu.memory_space<vmem>>, %arg11: memref<1x32xf32, #tpu.memory_space<vmem>>, %arg12: memref<1x1xf32, #tpu.memory_space<vmem>>, %arg13: memref<8x1xf32, #tpu.memory_space<vmem>>, %arg14: memref<16x128xf32, #tpu.memory_space<vmem>>, %arg15: memref<16x128xf32, #tpu.memory_space<vmem>>, %arg16: memref<64x128xf32, #tpu.memory_space<vmem>>) attributes {dimension_semantics = [], scalar_prefetch = 0 : i64, scratch_operands = 3 : i64, tpu.core_type = #tpu.core_type<tc>} {
    %c0 = arith.constant 0 : index
    %c0_0 = arith.constant 0 : index
    %0 = vector.load %arg2[%c0, %c0_0] : memref<16x32xf32, #tpu.memory_space<vmem>>, vector<16x32xf32>
    %c0_1 = arith.constant 0 : index
    %c0_2 = arith.constant 0 : index
    %1 = vector.load %arg4[%c0_1, %c0_2] : memref<32x128xf32, #tpu.memory_space<vmem>>, vector<32x128xf32>
    %cst = arith.constant dense<0.000000e+00> : vector<16x128xf32>
    %2 = tpu.matmul %0, %1, %cst {dimension_numbers = #tpu.dot_dimension_numbers<[1], [0], [0], [1], [0, 0, 1, 1], [], []>} : vector<16x32xf32>, vector<32x128xf32>, vector<16x128xf32> -> vector<16x128xf32>
    %c0_3 = arith.constant 0 : index
    %c0_4 = arith.constant 0 : index
    %3 = vector.load %arg7[%c0_3, %c0_4] : memref<1x128xf32, #tpu.memory_space<vmem>>, vector<1x128xf32>
    %4 = vector.broadcast %3 : vector<1x128xf32> to vector<16x128xf32>
    %5 = arith.addf %2, %4 : vector<16x128xf32>
    %c0_5 = arith.constant 0 : index
    %c0_6 = arith.constant 0 : index
    %6 = vector.load %arg14[%c0_5, %c0_6] : memref<16x128xf32, #tpu.memory_space<vmem>>, vector<16x128xf32>
    tpu.vector_store %arg14[%c0_5, %c0_6], %5 {strides = array<i32>} : memref<16x128xf32, #tpu.memory_space<vmem>>, vector<16x128xf32>,
    %c0_7 = arith.constant 0 : index
    %c0_8 = arith.constant 0 : index
    %7 = vector.load %arg3[%c0_7, %c0_8] : memref<16x32xf32, #tpu.memory_space<vmem>>, vector<16x32xf32>
    %c0_9 = arith.constant 0 : index
    %c0_10 = arith.constant 0 : index
    %8 = vector.load %arg5[%c0_9, %c0_10] : memref<32x128xf32, #tpu.memory_space<vmem>>, vector<32x128xf32>
    %cst_11 = arith.constant dense<0.000000e+00> : vector<16x128xf32>
    %9 = tpu.matmul %7, %8, %cst_11 {dimension_numbers = #tpu.dot_dimension_numbers<[1], [0], [0], [1], [0, 0, 1, 1], [], []>} : vector<16x32xf32>, vector<32x128xf32>, vector<16x128xf32> -> vector<16x128xf32>
    %c0_12 = arith.constant 0 : index
    %c0_13 = arith.constant 0 : index
    %10 = vector.load %arg15[%c0_12, %c0_13] : memref<16x128xf32, #tpu.memory_space<vmem>>, vector<16x128xf32>
    tpu.vector_store %arg15[%c0_12, %c0_13], %9 {strides = array<i32>} : memref<16x128xf32, #tpu.memory_space<vmem>>, vector<16x128xf32>,
    %cst_14 = arith.constant 0.000000e+00 : f32
    %11 = vector.broadcast %cst_14 : f32 to vector<64x128xf32>
    %c0_15 = arith.constant 0 : index
    %c0_16 = arith.constant 0 : index
    %12 = vector.load %arg16[%c0_15, %c0_16] : memref<64x128xf32, #tpu.memory_space<vmem>>, vector<64x128xf32>
    tpu.vector_store %arg16[%c0_15, %c0_16], %11 {strides = array<i32>} : memref<64x128xf32, #tpu.memory_space<vmem>>, vector<64x128xf32>,
    %c0_17 = arith.constant 0 : index
    %c0_18 = arith.constant 0 : index
    %13 = memref.load %arg0[%c0_17, %c0_18] : memref<2x8xi32, #tpu.memory_space<smem>>
    %c0_19 = arith.constant 0 : index
    %c0_20 = arith.constant 0 : index
    %14 = memref.load %arg1[%c0_19, %c0_20] : memref<2x8xi32, #tpu.memory_space<smem>>
    %15 = arith.index_cast %13 : i32 to index
    %c0_21 = arith.constant 0 : index
    %16 = vector.load %arg14[%15, %c0_21] : memref<16x128xf32, #tpu.memory_space<vmem>>, vector<1x128xf32>
    %17 = arith.index_cast %14 : i32 to index
    %c0_22 = arith.constant 0 : index
    %18 = vector.load %arg15[%17, %c0_22] : memref<16x128xf32, #tpu.memory_space<vmem>>, vector<1x128xf32>
    %19 = arith.addf %16, %18 : vector<1x128xf32>
    %c0_23 = arith.constant 0 : index
    %c0_24 = arith.constant 0 : index
    %20 = vector.load %arg16[%c0_23, %c0_24] : memref<64x128xf32, #tpu.memory_space<vmem>>, vector<1x128xf32>
    tpu.vector_store %arg16[%c0_23, %c0_24], %19 {strides = array<i32>} : memref<64x128xf32, #tpu.memory_space<vmem>>, vector<1x128xf32>,
    %c1 = arith.constant 1 : index
    %c0_25 = arith.constant 0 : index
    %21 = memref.load %arg0[%c1, %c0_25] : memref<2x8xi32, #tpu.memory_space<smem>>
    %c1_26 = arith.constant 1 : index
    %c0_27 = arith.constant 0 : index
    %22 = memref.load %arg1[%c1_26, %c0_27] : memref<2x8xi32, #tpu.memory_space<smem>>
    %23 = arith.index_cast %21 : i32 to index
    %c0_28 = arith.constant 0 : index
    %24 = vector.load %arg14[%23, %c0_28] : memref<16x128xf32, #tpu.memory_space<vmem>>, vector<1x128xf32>
    %25 = arith.index_cast %22 : i32 to index
    %c0_29 = arith.constant 0 : index
    %26 = vector.load %arg15[%25, %c0_29] : memref<16x128xf32, #tpu.memory_space<vmem>>, vector<1x128xf32>
    %27 = arith.addf %24, %26 : vector<1x128xf32>
    %c1_30 = arith.constant 1 : index
    %c0_31 = arith.constant 0 : index
    %28 = vector.load %arg16[%c1_30, %c0_31] : memref<64x128xf32, #tpu.memory_space<vmem>>, vector<1x128xf32>
    tpu.vector_store %arg16[%c1_30, %c0_31], %27 {strides = array<i32>} : memref<64x128xf32, #tpu.memory_space<vmem>>, vector<1x128xf32>,
    %c0_32 = arith.constant 0 : index
    %c1_33 = arith.constant 1 : index
    %29 = memref.load %arg0[%c0_32, %c1_33] : memref<2x8xi32, #tpu.memory_space<smem>>
    %c0_34 = arith.constant 0 : index
    %c1_35 = arith.constant 1 : index
    %30 = memref.load %arg1[%c0_34, %c1_35] : memref<2x8xi32, #tpu.memory_space<smem>>
    %31 = arith.index_cast %29 : i32 to index
    %c0_36 = arith.constant 0 : index
    %32 = vector.load %arg14[%31, %c0_36] : memref<16x128xf32, #tpu.memory_space<vmem>>, vector<1x128xf32>
    %33 = arith.index_cast %30 : i32 to index
    %c0_37 = arith.constant 0 : index
    %34 = vector.load %arg15[%33, %c0_37] : memref<16x128xf32, #tpu.memory_space<vmem>>, vector<1x128xf32>
    %35 = arith.addf %32, %34 : vector<1x128xf32>
    %c8 = arith.constant 8 : index
    %c0_38 = arith.constant 0 : index
    %36 = vector.load %arg16[%c8, %c0_38] : memref<64x128xf32, #tpu.memory_space<vmem>>, vector<1x128xf32>
    tpu.vector_store %arg16[%c8, %c0_38], %35 {strides = array<i32>} : memref<64x128xf32, #tpu.memory_space<vmem>>, vector<1x128xf32>,
    %c1_39 = arith.constant 1 : index
    %c1_40 = arith.constant 1 : index
    %37 = memref.load %arg0[%c1_39, %c1_40] : memref<2x8xi32, #tpu.memory_space<smem>>
    %c1_41 = arith.constant 1 : index
    %c1_42 = arith.constant 1 : index
    %38 = memref.load %arg1[%c1_41, %c1_42] : memref<2x8xi32, #tpu.memory_space<smem>>
    %39 = arith.index_cast %37 : i32 to index
    %c0_43 = arith.constant 0 : index
    %40 = vector.load %arg14[%39, %c0_43] : memref<16x128xf32, #tpu.memory_space<vmem>>, vector<1x128xf32>
    %41 = arith.index_cast %38 : i32 to index
    %c0_44 = arith.constant 0 : index
    %42 = vector.load %arg15[%41, %c0_44] : memref<16x128xf32, #tpu.memory_space<vmem>>, vector<1x128xf32>
    %43 = arith.addf %40, %42 : vector<1x128xf32>
    %c9 = arith.constant 9 : index
    %c0_45 = arith.constant 0 : index
    %44 = vector.load %arg16[%c9, %c0_45] : memref<64x128xf32, #tpu.memory_space<vmem>>, vector<1x128xf32>
    tpu.vector_store %arg16[%c9, %c0_45], %43 {strides = array<i32>} : memref<64x128xf32, #tpu.memory_space<vmem>>, vector<1x128xf32>,
    %c0_46 = arith.constant 0 : index
    %c2 = arith.constant 2 : index
    %45 = memref.load %arg0[%c0_46, %c2] : memref<2x8xi32, #tpu.memory_space<smem>>
    %c0_47 = arith.constant 0 : index
    %c2_48 = arith.constant 2 : index
    %46 = memref.load %arg1[%c0_47, %c2_48] : memref<2x8xi32, #tpu.memory_space<smem>>
    %47 = arith.index_cast %45 : i32 to index
    %c0_49 = arith.constant 0 : index
    %48 = vector.load %arg14[%47, %c0_49] : memref<16x128xf32, #tpu.memory_space<vmem>>, vector<1x128xf32>
    %49 = arith.index_cast %46 : i32 to index
    %c0_50 = arith.constant 0 : index
    %50 = vector.load %arg15[%49, %c0_50] : memref<16x128xf32, #tpu.memory_space<vmem>>, vector<1x128xf32>
    %51 = arith.addf %48, %50 : vector<1x128xf32>
    %c16 = arith.constant 16 : index
    %c0_51 = arith.constant 0 : index
    %52 = vector.load %arg16[%c16, %c0_51] : memref<64x128xf32, #tpu.memory_space<vmem>>, vector<1x128xf32>
    tpu.vector_store %arg16[%c16, %c0_51], %51 {strides = array<i32>} : memref<64x128xf32, #tpu.memory_space<vmem>>, vector<1x128xf32>,
    %c1_52 = arith.constant 1 : index
    %c2_53 = arith.constant 2 : index
    %53 = memref.load %arg0[%c1_52, %c2_53] : memref<2x8xi32, #tpu.memory_space<smem>>
    %c1_54 = arith.constant 1 : index
    %c2_55 = arith.constant 2 : index
    %54 = memref.load %arg1[%c1_54, %c2_55] : memref<2x8xi32, #tpu.memory_space<smem>>
    %55 = arith.index_cast %53 : i32 to index
    %c0_56 = arith.constant 0 : index
    %56 = vector.load %arg14[%55, %c0_56] : memref<16x128xf32, #tpu.memory_space<vmem>>, vector<1x128xf32>
    %57 = arith.index_cast %54 : i32 to index
    %c0_57 = arith.constant 0 : index
    %58 = vector.load %arg15[%57, %c0_57] : memref<16x128xf32, #tpu.memory_space<vmem>>, vector<1x128xf32>
    %59 = arith.addf %56, %58 : vector<1x128xf32>
    %c17 = arith.constant 17 : index
    %c0_58 = arith.constant 0 : index
    %60 = vector.load %arg16[%c17, %c0_58] : memref<64x128xf32, #tpu.memory_space<vmem>>, vector<1x128xf32>
    tpu.vector_store %arg16[%c17, %c0_58], %59 {strides = array<i32>} : memref<64x128xf32, #tpu.memory_space<vmem>>, vector<1x128xf32>,
    %c0_59 = arith.constant 0 : index
    %c3 = arith.constant 3 : index
    %61 = memref.load %arg0[%c0_59, %c3] : memref<2x8xi32, #tpu.memory_space<smem>>
    %c0_60 = arith.constant 0 : index
    %c3_61 = arith.constant 3 : index
    %62 = memref.load %arg1[%c0_60, %c3_61] : memref<2x8xi32, #tpu.memory_space<smem>>
    %63 = arith.index_cast %61 : i32 to index
    %c0_62 = arith.constant 0 : index
    %64 = vector.load %arg14[%63, %c0_62] : memref<16x128xf32, #tpu.memory_space<vmem>>, vector<1x128xf32>
    %65 = arith.index_cast %62 : i32 to index
    %c0_63 = arith.constant 0 : index
    %66 = vector.load %arg15[%65, %c0_63] : memref<16x128xf32, #tpu.memory_space<vmem>>, vector<1x128xf32>
    %67 = arith.addf %64, %66 : vector<1x128xf32>
    %c24 = arith.constant 24 : index
    %c0_64 = arith.constant 0 : index
    %68 = vector.load %arg16[%c24, %c0_64] : memref<64x128xf32, #tpu.memory_space<vmem>>, vector<1x128xf32>
    tpu.vector_store %arg16[%c24, %c0_64], %67 {strides = array<i32>} : memref<64x128xf32, #tpu.memory_space<vmem>>, vector<1x128xf32>,
    %c1_65 = arith.constant 1 : index
    %c3_66 = arith.constant 3 : index
    %69 = memref.load %arg0[%c1_65, %c3_66] : memref<2x8xi32, #tpu.memory_space<smem>>
    %c1_67 = arith.constant 1 : index
    %c3_68 = arith.constant 3 : index
    %70 = memref.load %arg1[%c1_67, %c3_68] : memref<2x8xi32, #tpu.memory_space<smem>>
    %71 = arith.index_cast %69 : i32 to index
    %c0_69 = arith.constant 0 : index
    %72 = vector.load %arg14[%71, %c0_69] : memref<16x128xf32, #tpu.memory_space<vmem>>, vector<1x128xf32>
    %73 = arith.index_cast %70 : i32 to index
    %c0_70 = arith.constant 0 : index
    %74 = vector.load %arg15[%73, %c0_70] : memref<16x128xf32, #tpu.memory_space<vmem>>, vector<1x128xf32>
    %75 = arith.addf %72, %74 : vector<1x128xf32>
    %c25 = arith.constant 25 : index
    %c0_71 = arith.constant 0 : index
    %76 = vector.load %arg16[%c25, %c0_71] : memref<64x128xf32, #tpu.memory_space<vmem>>, vector<1x128xf32>
    tpu.vector_store %arg16[%c25, %c0_71], %75 {strides = array<i32>} : memref<64x128xf32, #tpu.memory_space<vmem>>, vector<1x128xf32>,
    %c0_72 = arith.constant 0 : index
    %c4 = arith.constant 4 : index
    %77 = memref.load %arg0[%c0_72, %c4] : memref<2x8xi32, #tpu.memory_space<smem>>
    %c0_73 = arith.constant 0 : index
    %c4_74 = arith.constant 4 : index
    %78 = memref.load %arg1[%c0_73, %c4_74] : memref<2x8xi32, #tpu.memory_space<smem>>
    %79 = arith.index_cast %77 : i32 to index
    %c0_75 = arith.constant 0 : index
    %80 = vector.load %arg14[%79, %c0_75] : memref<16x128xf32, #tpu.memory_space<vmem>>, vector<1x128xf32>
    %81 = arith.index_cast %78 : i32 to index
    %c0_76 = arith.constant 0 : index
    %82 = vector.load %arg15[%81, %c0_76] : memref<16x128xf32, #tpu.memory_space<vmem>>, vector<1x128xf32>
    %83 = arith.addf %80, %82 : vector<1x128xf32>
    %c32 = arith.constant 32 : index
    %c0_77 = arith.constant 0 : index
    %84 = vector.load %arg16[%c32, %c0_77] : memref<64x128xf32, #tpu.memory_space<vmem>>, vector<1x128xf32>
    tpu.vector_store %arg16[%c32, %c0_77], %83 {strides = array<i32>} : memref<64x128xf32, #tpu.memory_space<vmem>>, vector<1x128xf32>,
    %c1_78 = arith.constant 1 : index
    %c4_79 = arith.constant 4 : index
    %85 = memref.load %arg0[%c1_78, %c4_79] : memref<2x8xi32, #tpu.memory_space<smem>>
    %c1_80 = arith.constant 1 : index
    %c4_81 = arith.constant 4 : index
    %86 = memref.load %arg1[%c1_80, %c4_81] : memref<2x8xi32, #tpu.memory_space<smem>>
    %87 = arith.index_cast %85 : i32 to index
    %c0_82 = arith.constant 0 : index
    %88 = vector.load %arg14[%87, %c0_82] : memref<16x128xf32, #tpu.memory_space<vmem>>, vector<1x128xf32>
    %89 = arith.index_cast %86 : i32 to index
    %c0_83 = arith.constant 0 : index
    %90 = vector.load %arg15[%89, %c0_83] : memref<16x128xf32, #tpu.memory_space<vmem>>, vector<1x128xf32>
    %91 = arith.addf %88, %90 : vector<1x128xf32>
    %c33 = arith.constant 33 : index
    %c0_84 = arith.constant 0 : index
    %92 = vector.load %arg16[%c33, %c0_84] : memref<64x128xf32, #tpu.memory_space<vmem>>, vector<1x128xf32>
    tpu.vector_store %arg16[%c33, %c0_84], %91 {strides = array<i32>} : memref<64x128xf32, #tpu.memory_space<vmem>>, vector<1x128xf32>,
    %c0_85 = arith.constant 0 : index
    %c5 = arith.constant 5 : index
    %93 = memref.load %arg0[%c0_85, %c5] : memref<2x8xi32, #tpu.memory_space<smem>>
    %c0_86 = arith.constant 0 : index
    %c5_87 = arith.constant 5 : index
    %94 = memref.load %arg1[%c0_86, %c5_87] : memref<2x8xi32, #tpu.memory_space<smem>>
    %95 = arith.index_cast %93 : i32 to index
    %c0_88 = arith.constant 0 : index
    %96 = vector.load %arg14[%95, %c0_88] : memref<16x128xf32, #tpu.memory_space<vmem>>, vector<1x128xf32>
    %97 = arith.index_cast %94 : i32 to index
    %c0_89 = arith.constant 0 : index
    %98 = vector.load %arg15[%97, %c0_89] : memref<16x128xf32, #tpu.memory_space<vmem>>, vector<1x128xf32>
    %99 = arith.addf %96, %98 : vector<1x128xf32>
    %c40 = arith.constant 40 : index
    %c0_90 = arith.constant 0 : index
    %100 = vector.load %arg16[%c40, %c0_90] : memref<64x128xf32, #tpu.memory_space<vmem>>, vector<1x128xf32>
    tpu.vector_store %arg16[%c40, %c0_90], %99 {strides = array<i32>} : memref<64x128xf32, #tpu.memory_space<vmem>>, vector<1x128xf32>,
    %c1_91 = arith.constant 1 : index
    %c5_92 = arith.constant 5 : index
    %101 = memref.load %arg0[%c1_91, %c5_92] : memref<2x8xi32, #tpu.memory_space<smem>>
    %c1_93 = arith.constant 1 : index
    %c5_94 = arith.constant 5 : index
    %102 = memref.load %arg1[%c1_93, %c5_94] : memref<2x8xi32, #tpu.memory_space<smem>>
    %103 = arith.index_cast %101 : i32 to index
    %c0_95 = arith.constant 0 : index
    %104 = vector.load %arg14[%103, %c0_95] : memref<16x128xf32, #tpu.memory_space<vmem>>, vector<1x128xf32>
    %105 = arith.index_cast %102 : i32 to index
    %c0_96 = arith.constant 0 : index
    %106 = vector.load %arg15[%105, %c0_96] : memref<16x128xf32, #tpu.memory_space<vmem>>, vector<1x128xf32>
    %107 = arith.addf %104, %106 : vector<1x128xf32>
    %c41 = arith.constant 41 : index
    %c0_97 = arith.constant 0 : index
    %108 = vector.load %arg16[%c41, %c0_97] : memref<64x128xf32, #tpu.memory_space<vmem>>, vector<1x128xf32>
    tpu.vector_store %arg16[%c41, %c0_97], %107 {strides = array<i32>} : memref<64x128xf32, #tpu.memory_space<vmem>>, vector<1x128xf32>,
    %c0_98 = arith.constant 0 : index
    %c6 = arith.constant 6 : index
    %109 = memref.load %arg0[%c0_98, %c6] : memref<2x8xi32, #tpu.memory_space<smem>>
    %c0_99 = arith.constant 0 : index
    %c6_100 = arith.constant 6 : index
    %110 = memref.load %arg1[%c0_99, %c6_100] : memref<2x8xi32, #tpu.memory_space<smem>>
    %111 = arith.index_cast %109 : i32 to index
    %c0_101 = arith.constant 0 : index
    %112 = vector.load %arg14[%111, %c0_101] : memref<16x128xf32, #tpu.memory_space<vmem>>, vector<1x128xf32>
    %113 = arith.index_cast %110 : i32 to index
    %c0_102 = arith.constant 0 : index
    %114 = vector.load %arg15[%113, %c0_102] : memref<16x128xf32, #tpu.memory_space<vmem>>, vector<1x128xf32>
    %115 = arith.addf %112, %114 : vector<1x128xf32>
    %c48 = arith.constant 48 : index
    %c0_103 = arith.constant 0 : index
    %116 = vector.load %arg16[%c48, %c0_103] : memref<64x128xf32, #tpu.memory_space<vmem>>, vector<1x128xf32>
    tpu.vector_store %arg16[%c48, %c0_103], %115 {strides = array<i32>} : memref<64x128xf32, #tpu.memory_space<vmem>>, vector<1x128xf32>,
    %c1_104 = arith.constant 1 : index
    %c6_105 = arith.constant 6 : index
    %117 = memref.load %arg0[%c1_104, %c6_105] : memref<2x8xi32, #tpu.memory_space<smem>>
    %c1_106 = arith.constant 1 : index
    %c6_107 = arith.constant 6 : index
    %118 = memref.load %arg1[%c1_106, %c6_107] : memref<2x8xi32, #tpu.memory_space<smem>>
    %119 = arith.index_cast %117 : i32 to index
    %c0_108 = arith.constant 0 : index
    %120 = vector.load %arg14[%119, %c0_108] : memref<16x128xf32, #tpu.memory_space<vmem>>, vector<1x128xf32>
    %121 = arith.index_cast %118 : i32 to index
    %c0_109 = arith.constant 0 : index
    %122 = vector.load %arg15[%121, %c0_109] : memref<16x128xf32, #tpu.memory_space<vmem>>, vector<1x128xf32>
    %123 = arith.addf %120, %122 : vector<1x128xf32>
    %c49 = arith.constant 49 : index
    %c0_110 = arith.constant 0 : index
    %124 = vector.load %arg16[%c49, %c0_110] : memref<64x128xf32, #tpu.memory_space<vmem>>, vector<1x128xf32>
    tpu.vector_store %arg16[%c49, %c0_110], %123 {strides = array<i32>} : memref<64x128xf32, #tpu.memory_space<vmem>>, vector<1x128xf32>,
    %c0_111 = arith.constant 0 : index
    %c7 = arith.constant 7 : index
    %125 = memref.load %arg0[%c0_111, %c7] : memref<2x8xi32, #tpu.memory_space<smem>>
    %c0_112 = arith.constant 0 : index
    %c7_113 = arith.constant 7 : index
    %126 = memref.load %arg1[%c0_112, %c7_113] : memref<2x8xi32, #tpu.memory_space<smem>>
    %127 = arith.index_cast %125 : i32 to index
    %c0_114 = arith.constant 0 : index
    %128 = vector.load %arg14[%127, %c0_114] : memref<16x128xf32, #tpu.memory_space<vmem>>, vector<1x128xf32>
    %129 = arith.index_cast %126 : i32 to index
    %c0_115 = arith.constant 0 : index
    %130 = vector.load %arg15[%129, %c0_115] : memref<16x128xf32, #tpu.memory_space<vmem>>, vector<1x128xf32>
    %131 = arith.addf %128, %130 : vector<1x128xf32>
    %c56 = arith.constant 56 : index
    %c0_116 = arith.constant 0 : index
    %132 = vector.load %arg16[%c56, %c0_116] : memref<64x128xf32, #tpu.memory_space<vmem>>, vector<1x128xf32>
    tpu.vector_store %arg16[%c56, %c0_116], %131 {strides = array<i32>} : memref<64x128xf32, #tpu.memory_space<vmem>>, vector<1x128xf32>,
    %c1_117 = arith.constant 1 : index
    %c7_118 = arith.constant 7 : index
    %133 = memref.load %arg0[%c1_117, %c7_118] : memref<2x8xi32, #tpu.memory_space<smem>>
    %c1_119 = arith.constant 1 : index
    %c7_120 = arith.constant 7 : index
    %134 = memref.load %arg1[%c1_119, %c7_120] : memref<2x8xi32, #tpu.memory_space<smem>>
    %135 = arith.index_cast %133 : i32 to index
    %c0_121 = arith.constant 0 : index
    %136 = vector.load %arg14[%135, %c0_121] : memref<16x128xf32, #tpu.memory_space<vmem>>, vector<1x128xf32>
    %137 = arith.index_cast %134 : i32 to index
    %c0_122 = arith.constant 0 : index
    %138 = vector.load %arg15[%137, %c0_122] : memref<16x128xf32, #tpu.memory_space<vmem>>, vector<1x128xf32>
    %139 = arith.addf %136, %138 : vector<1x128xf32>
    %c57 = arith.constant 57 : index
    %c0_123 = arith.constant 0 : index
    %140 = vector.load %arg16[%c57, %c0_123] : memref<64x128xf32, #tpu.memory_space<vmem>>, vector<1x128xf32>
    tpu.vector_store %arg16[%c57, %c0_123], %139 {strides = array<i32>} : memref<64x128xf32, #tpu.memory_space<vmem>>, vector<1x128xf32>,
    %c0_124 = arith.constant 0 : index
    %c0_125 = arith.constant 0 : index
    %141 = vector.load %arg6[%c0_124, %c0_125] : memref<32x128xf32, #tpu.memory_space<vmem>>, vector<32x128xf32>
    %c0_126 = arith.constant 0 : index
    %c0_127 = arith.constant 0 : index
    %142 = vector.load %arg8[%c0_126, %c0_127] : memref<32x128xf32, #tpu.memory_space<vmem>>, vector<32x128xf32>
    %c0_128 = arith.constant 0 : index
    %c0_129 = arith.constant 0 : index
    %143 = vector.load %arg9[%c0_128, %c0_129] : memref<32x128xf32, #tpu.memory_space<vmem>>, vector<32x128xf32>
    %c0_130 = arith.constant 0 : index
    %c0_131 = arith.constant 0 : index
    %144 = vector.load %arg10[%c0_130, %c0_131] : memref<1x128xf32, #tpu.memory_space<vmem>>, vector<1x128xf32>
    %145 = vector.shape_cast %144 : vector<1x128xf32> to vector<1x128xf32>
    %146 = vector.broadcast %145 : vector<1x128xf32> to vector<8x128xf32>
    %147 = tpu.iota {dimensions = array<i32: 1>} : vector<8x128xi32>
    %c64_i32 = arith.constant 64 : i32
    %148 = vector.broadcast %c64_i32 : i32 to vector<8x128xi32>
    %149 = arith.cmpi sge, %147, %148 : vector<8x128xi32>
    %c96_i32 = arith.constant 96 : i32
    %150 = vector.broadcast %c96_i32 : i32 to vector<8x128xi32>
    %151 = arith.cmpi slt, %147, %150 : vector<8x128xi32>
    %152 = arith.andi %149, %151 : vector<8x128xi1>
    %cst_132 = arith.constant 1.000000e+00 : f32
    %cst_133 = arith.constant 5.000000e-01 : f32
    %153 = vector.broadcast %cst_132 : f32 to vector<8x128xf32>
    %154 = vector.broadcast %cst_133 : f32 to vector<8x128xf32>
    %155 = arith.select %152, %153, %154 : vector<8x128xi1>, vector<8x128xf32>
    %cst_134 = arith.constant 0.000000e+00 : f32
    %cst_135 = arith.constant 5.000000e-01 : f32
    %156 = vector.broadcast %cst_134 : f32 to vector<8x128xf32>
    %157 = vector.broadcast %cst_135 : f32 to vector<8x128xf32>
    %158 = arith.select %152, %156, %157 : vector<8x128xi1>, vector<8x128xf32>
    %cst_136 = arith.constant 0.000000e+00 : f32
    %159 = vector.broadcast %cst_136 : f32 to vector<8x32xf32>
    %c0_137 = arith.constant 0 : index
    %c0_138 = arith.constant 0 : index
    %160 = vector.load %arg16[%c0_137, %c0_138] : memref<64x128xf32, #tpu.memory_space<vmem>>, vector<8x128xf32>
    %cst_139 = arith.constant dense<0.000000e+00> : vector<8x128xf32>
    %161 = tpu.matmul %159, %141, %cst_139 {dimension_numbers = #tpu.dot_dimension_numbers<[1], [0], [0], [1], [0, 0, 1, 1], [], []>} : vector<8x32xf32>, vector<32x128xf32>, vector<8x128xf32> -> vector<8x128xf32>
    %162 = arith.addf %160, %161 : vector<8x128xf32>
    %163 = arith.mulf %162, %155 : vector<8x128xf32>
    %164 = math.tanh %163 : vector<8x128xf32>
    %165 = arith.mulf %164, %155 : vector<8x128xf32>
    %166 = arith.addf %165, %158 : vector<8x128xf32>
    %167 = vector.extract_strided_slice %166 {offsets = [0, 0], sizes = [8, 32], strides = [1, 1]} : vector<8x128xf32> to vector<8x32xf32>
    %168 = vector.extract_strided_slice %166 {offsets = [0, 32], sizes = [8, 32], strides = [1, 1]} : vector<8x128xf32> to vector<8x32xf32>
    %169 = vector.extract_strided_slice %166 {offsets = [0, 64], sizes = [8, 32], strides = [1, 1]} : vector<8x128xf32> to vector<8x32xf32>
    %170 = vector.extract_strided_slice %166 {offsets = [0, 96], sizes = [8, 32], strides = [1, 1]} : vector<8x128xf32> to vector<8x32xf32>
    %171 = arith.mulf %168, %159 : vector<8x32xf32>
    %172 = arith.mulf %167, %169 : vector<8x32xf32>
    %173 = arith.addf %171, %172 : vector<8x32xf32>
    %174 = math.tanh %173 : vector<8x32xf32>
    %175 = arith.mulf %170, %174 : vector<8x32xf32>
    %cst_140 = arith.constant dense<0.000000e+00> : vector<8x128xf32>
    %176 = tpu.matmul %175, %142, %cst_140 {dimension_numbers = #tpu.dot_dimension_numbers<[1], [0], [0], [1], [0, 0, 1, 1], [], []>} : vector<8x32xf32>, vector<32x128xf32>, vector<8x128xf32> -> vector<8x128xf32>
    %cst_141 = arith.constant dense<0.000000e+00> : vector<8x128xf32>
    %177 = tpu.matmul %159, %143, %cst_141 {dimension_numbers = #tpu.dot_dimension_numbers<[1], [0], [0], [1], [0, 0, 1, 1], [], []>} : vector<8x32xf32>, vector<32x128xf32>, vector<8x128xf32> -> vector<8x128xf32>
    %178 = arith.addf %176, %177 : vector<8x128xf32>
    %179 = arith.addf %178, %146 : vector<8x128xf32>
    %180 = arith.mulf %179, %155 : vector<8x128xf32>
    %181 = math.tanh %180 : vector<8x128xf32>
    %182 = arith.mulf %181, %155 : vector<8x128xf32>
    %183 = arith.addf %182, %158 : vector<8x128xf32>
    %184 = vector.extract_strided_slice %183 {offsets = [0, 0], sizes = [8, 32], strides = [1, 1]} : vector<8x128xf32> to vector<8x32xf32>
    %185 = vector.extract_strided_slice %183 {offsets = [0, 32], sizes = [8, 32], strides = [1, 1]} : vector<8x128xf32> to vector<8x32xf32>
    %186 = vector.extract_strided_slice %183 {offsets = [0, 64], sizes = [8, 32], strides = [1, 1]} : vector<8x128xf32> to vector<8x32xf32>
    %187 = vector.extract_strided_slice %183 {offsets = [0, 96], sizes = [8, 32], strides = [1, 1]} : vector<8x128xf32> to vector<8x32xf32>
    %188 = arith.mulf %185, %159 : vector<8x32xf32>
    %189 = arith.mulf %184, %186 : vector<8x32xf32>
    %190 = arith.addf %188, %189 : vector<8x32xf32>
    %191 = math.tanh %190 : vector<8x32xf32>
    %192 = arith.mulf %187, %191 : vector<8x32xf32>
    %c8_142 = arith.constant 8 : index
    %c0_143 = arith.constant 0 : index
    %193 = vector.load %arg16[%c8_142, %c0_143] : memref<64x128xf32, #tpu.memory_space<vmem>>, vector<8x128xf32>
    %cst_144 = arith.constant dense<0.000000e+00> : vector<8x128xf32>
    %194 = tpu.matmul %175, %141, %cst_144 {dimension_numbers = #tpu.dot_dimension_numbers<[1], [0], [0], [1], [0, 0, 1, 1], [], []>} : vector<8x32xf32>, vector<32x128xf32>, vector<8x128xf32> -> vector<8x128xf32>
    %195 = arith.addf %193, %194 : vector<8x128xf32>
    %196 = arith.mulf %195, %155 : vector<8x128xf32>
    %197 = math.tanh %196 : vector<8x128xf32>
    %198 = arith.mulf %197, %155 : vector<8x128xf32>
    %199 = arith.addf %198, %158 : vector<8x128xf32>
    %200 = vector.extract_strided_slice %199 {offsets = [0, 0], sizes = [8, 32], strides = [1, 1]} : vector<8x128xf32> to vector<8x32xf32>
    %201 = vector.extract_strided_slice %199 {offsets = [0, 32], sizes = [8, 32], strides = [1, 1]} : vector<8x128xf32> to vector<8x32xf32>
    %202 = vector.extract_strided_slice %199 {offsets = [0, 64], sizes = [8, 32], strides = [1, 1]} : vector<8x128xf32> to vector<8x32xf32>
    %203 = vector.extract_strided_slice %199 {offsets = [0, 96], sizes = [8, 32], strides = [1, 1]} : vector<8x128xf32> to vector<8x32xf32>
    %204 = arith.mulf %201, %173 : vector<8x32xf32>
    %205 = arith.mulf %200, %202 : vector<8x32xf32>
    %206 = arith.addf %204, %205 : vector<8x32xf32>
    %207 = math.tanh %206 : vector<8x32xf32>
    %208 = arith.mulf %203, %207 : vector<8x32xf32>
    %cst_145 = arith.constant dense<0.000000e+00> : vector<8x128xf32>
    %209 = tpu.matmul %208, %142, %cst_145 {dimension_numbers = #tpu.dot_dimension_numbers<[1], [0], [0], [1], [0, 0, 1, 1], [], []>} : vector<8x32xf32>, vector<32x128xf32>, vector<8x128xf32> -> vector<8x128xf32>
    %cst_146 = arith.constant dense<0.000000e+00> : vector<8x128xf32>
    %210 = tpu.matmul %192, %143, %cst_146 {dimension_numbers = #tpu.dot_dimension_numbers<[1], [0], [0], [1], [0, 0, 1, 1], [], []>} : vector<8x32xf32>, vector<32x128xf32>, vector<8x128xf32> -> vector<8x128xf32>
    %211 = arith.addf %209, %210 : vector<8x128xf32>
    %212 = arith.addf %211, %146 : vector<8x128xf32>
    %213 = arith.mulf %212, %155 : vector<8x128xf32>
    %214 = math.tanh %213 : vector<8x128xf32>
    %215 = arith.mulf %214, %155 : vector<8x128xf32>
    %216 = arith.addf %215, %158 : vector<8x128xf32>
    %217 = vector.extract_strided_slice %216 {offsets = [0, 0], sizes = [8, 32], strides = [1, 1]} : vector<8x128xf32> to vector<8x32xf32>
    %218 = vector.extract_strided_slice %216 {offsets = [0, 32], sizes = [8, 32], strides = [1, 1]} : vector<8x128xf32> to vector<8x32xf32>
    %219 = vector.extract_strided_slice %216 {offsets = [0, 64], sizes = [8, 32], strides = [1, 1]} : vector<8x128xf32> to vector<8x32xf32>
    %220 = vector.extract_strided_slice %216 {offsets = [0, 96], sizes = [8, 32], strides = [1, 1]} : vector<8x128xf32> to vector<8x32xf32>
    %221 = arith.mulf %218, %190 : vector<8x32xf32>
    %222 = arith.mulf %217, %219 : vector<8x32xf32>
    %223 = arith.addf %221, %222 : vector<8x32xf32>
    %224 = math.tanh %223 : vector<8x32xf32>
    %225 = arith.mulf %220, %224 : vector<8x32xf32>
    %c16_147 = arith.constant 16 : index
    %c0_148 = arith.constant 0 : index
    %226 = vector.load %arg16[%c16_147, %c0_148] : memref<64x128xf32, #tpu.memory_space<vmem>>, vector<8x128xf32>
    %cst_149 = arith.constant dense<0.000000e+00> : vector<8x128xf32>
    %227 = tpu.matmul %208, %141, %cst_149 {dimension_numbers = #tpu.dot_dimension_numbers<[1], [0], [0], [1], [0, 0, 1, 1], [], []>} : vector<8x32xf32>, vector<32x128xf32>, vector<8x128xf32> -> vector<8x128xf32>
    %228 = arith.addf %226, %227 : vector<8x128xf32>
    %229 = arith.mulf %228, %155 : vector<8x128xf32>
    %230 = math.tanh %229 : vector<8x128xf32>
    %231 = arith.mulf %230, %155 : vector<8x128xf32>
    %232 = arith.addf %231, %158 : vector<8x128xf32>
    %233 = vector.extract_strided_slice %232 {offsets = [0, 0], sizes = [8, 32], strides = [1, 1]} : vector<8x128xf32> to vector<8x32xf32>
    %234 = vector.extract_strided_slice %232 {offsets = [0, 32], sizes = [8, 32], strides = [1, 1]} : vector<8x128xf32> to vector<8x32xf32>
    %235 = vector.extract_strided_slice %232 {offsets = [0, 64], sizes = [8, 32], strides = [1, 1]} : vector<8x128xf32> to vector<8x32xf32>
    %236 = vector.extract_strided_slice %232 {offsets = [0, 96], sizes = [8, 32], strides = [1, 1]} : vector<8x128xf32> to vector<8x32xf32>
    %237 = arith.mulf %234, %206 : vector<8x32xf32>
    %238 = arith.mulf %233, %235 : vector<8x32xf32>
    %239 = arith.addf %237, %238 : vector<8x32xf32>
    %240 = math.tanh %239 : vector<8x32xf32>
    %241 = arith.mulf %236, %240 : vector<8x32xf32>
    %cst_150 = arith.constant dense<0.000000e+00> : vector<8x128xf32>
    %242 = tpu.matmul %241, %142, %cst_150 {dimension_numbers = #tpu.dot_dimension_numbers<[1], [0], [0], [1], [0, 0, 1, 1], [], []>} : vector<8x32xf32>, vector<32x128xf32>, vector<8x128xf32> -> vector<8x128xf32>
    %cst_151 = arith.constant dense<0.000000e+00> : vector<8x128xf32>
    %243 = tpu.matmul %225, %143, %cst_151 {dimension_numbers = #tpu.dot_dimension_numbers<[1], [0], [0], [1], [0, 0, 1, 1], [], []>} : vector<8x32xf32>, vector<32x128xf32>, vector<8x128xf32> -> vector<8x128xf32>
    %244 = arith.addf %242, %243 : vector<8x128xf32>
    %245 = arith.addf %244, %146 : vector<8x128xf32>
    %246 = arith.mulf %245, %155 : vector<8x128xf32>
    %247 = math.tanh %246 : vector<8x128xf32>
    %248 = arith.mulf %247, %155 : vector<8x128xf32>
    %249 = arith.addf %248, %158 : vector<8x128xf32>
    %250 = vector.extract_strided_slice %249 {offsets = [0, 0], sizes = [8, 32], strides = [1, 1]} : vector<8x128xf32> to vector<8x32xf32>
    %251 = vector.extract_strided_slice %249 {offsets = [0, 32], sizes = [8, 32], strides = [1, 1]} : vector<8x128xf32> to vector<8x32xf32>
    %252 = vector.extract_strided_slice %249 {offsets = [0, 64], sizes = [8, 32], strides = [1, 1]} : vector<8x128xf32> to vector<8x32xf32>
    %253 = vector.extract_strided_slice %249 {offsets = [0, 96], sizes = [8, 32], strides = [1, 1]} : vector<8x128xf32> to vector<8x32xf32>
    %254 = arith.mulf %251, %223 : vector<8x32xf32>
    %255 = arith.mulf %250, %252 : vector<8x32xf32>
    %256 = arith.addf %254, %255 : vector<8x32xf32>
    %257 = math.tanh %256 : vector<8x32xf32>
    %258 = arith.mulf %253, %257 : vector<8x32xf32>
    %c24_152 = arith.constant 24 : index
    %c0_153 = arith.constant 0 : index
    %259 = vector.load %arg16[%c24_152, %c0_153] : memref<64x128xf32, #tpu.memory_space<vmem>>, vector<8x128xf32>
    %cst_154 = arith.constant dense<0.000000e+00> : vector<8x128xf32>
    %260 = tpu.matmul %241, %141, %cst_154 {dimension_numbers = #tpu.dot_dimension_numbers<[1], [0], [0], [1], [0, 0, 1, 1], [], []>} : vector<8x32xf32>, vector<32x128xf32>, vector<8x128xf32> -> vector<8x128xf32>
    %261 = arith.addf %259, %260 : vector<8x128xf32>
    %262 = arith.mulf %261, %155 : vector<8x128xf32>
    %263 = math.tanh %262 : vector<8x128xf32>
    %264 = arith.mulf %263, %155 : vector<8x128xf32>
    %265 = arith.addf %264, %158 : vector<8x128xf32>
    %266 = vector.extract_strided_slice %265 {offsets = [0, 0], sizes = [8, 32], strides = [1, 1]} : vector<8x128xf32> to vector<8x32xf32>
    %267 = vector.extract_strided_slice %265 {offsets = [0, 32], sizes = [8, 32], strides = [1, 1]} : vector<8x128xf32> to vector<8x32xf32>
    %268 = vector.extract_strided_slice %265 {offsets = [0, 64], sizes = [8, 32], strides = [1, 1]} : vector<8x128xf32> to vector<8x32xf32>
    %269 = vector.extract_strided_slice %265 {offsets = [0, 96], sizes = [8, 32], strides = [1, 1]} : vector<8x128xf32> to vector<8x32xf32>
    %270 = arith.mulf %267, %239 : vector<8x32xf32>
    %271 = arith.mulf %266, %268 : vector<8x32xf32>
    %272 = arith.addf %270, %271 : vector<8x32xf32>
    %273 = math.tanh %272 : vector<8x32xf32>
    %274 = arith.mulf %269, %273 : vector<8x32xf32>
    %cst_155 = arith.constant dense<0.000000e+00> : vector<8x128xf32>
    %275 = tpu.matmul %274, %142, %cst_155 {dimension_numbers = #tpu.dot_dimension_numbers<[1], [0], [0], [1], [0, 0, 1, 1], [], []>} : vector<8x32xf32>, vector<32x128xf32>, vector<8x128xf32> -> vector<8x128xf32>
    %cst_156 = arith.constant dense<0.000000e+00> : vector<8x128xf32>
    %276 = tpu.matmul %258, %143, %cst_156 {dimension_numbers = #tpu.dot_dimension_numbers<[1], [0], [0], [1], [0, 0, 1, 1], [], []>} : vector<8x32xf32>, vector<32x128xf32>, vector<8x128xf32> -> vector<8x128xf32>
    %277 = arith.addf %275, %276 : vector<8x128xf32>
    %278 = arith.addf %277, %146 : vector<8x128xf32>
    %279 = arith.mulf %278, %155 : vector<8x128xf32>
    %280 = math.tanh %279 : vector<8x128xf32>
    %281 = arith.mulf %280, %155 : vector<8x128xf32>
    %282 = arith.addf %281, %158 : vector<8x128xf32>
    %283 = vector.extract_strided_slice %282 {offsets = [0, 0], sizes = [8, 32], strides = [1, 1]} : vector<8x128xf32> to vector<8x32xf32>
    %284 = vector.extract_strided_slice %282 {offsets = [0, 32], sizes = [8, 32], strides = [1, 1]} : vector<8x128xf32> to vector<8x32xf32>
    %285 = vector.extract_strided_slice %282 {offsets = [0, 64], sizes = [8, 32], strides = [1, 1]} : vector<8x128xf32> to vector<8x32xf32>
    %286 = vector.extract_strided_slice %282 {offsets = [0, 96], sizes = [8, 32], strides = [1, 1]} : vector<8x128xf32> to vector<8x32xf32>
    %287 = arith.mulf %284, %256 : vector<8x32xf32>
    %288 = arith.mulf %283, %285 : vector<8x32xf32>
    %289 = arith.addf %287, %288 : vector<8x32xf32>
    %290 = math.tanh %289 : vector<8x32xf32>
    %291 = arith.mulf %286, %290 : vector<8x32xf32>
    %c32_157 = arith.constant 32 : index
    %c0_158 = arith.constant 0 : index
    %292 = vector.load %arg16[%c32_157, %c0_158] : memref<64x128xf32, #tpu.memory_space<vmem>>, vector<8x128xf32>
    %cst_159 = arith.constant dense<0.000000e+00> : vector<8x128xf32>
    %293 = tpu.matmul %274, %141, %cst_159 {dimension_numbers = #tpu.dot_dimension_numbers<[1], [0], [0], [1], [0, 0, 1, 1], [], []>} : vector<8x32xf32>, vector<32x128xf32>, vector<8x128xf32> -> vector<8x128xf32>
    %294 = arith.addf %292, %293 : vector<8x128xf32>
    %295 = arith.mulf %294, %155 : vector<8x128xf32>
    %296 = math.tanh %295 : vector<8x128xf32>
    %297 = arith.mulf %296, %155 : vector<8x128xf32>
    %298 = arith.addf %297, %158 : vector<8x128xf32>
    %299 = vector.extract_strided_slice %298 {offsets = [0, 0], sizes = [8, 32], strides = [1, 1]} : vector<8x128xf32> to vector<8x32xf32>
    %300 = vector.extract_strided_slice %298 {offsets = [0, 32], sizes = [8, 32], strides = [1, 1]} : vector<8x128xf32> to vector<8x32xf32>
    %301 = vector.extract_strided_slice %298 {offsets = [0, 64], sizes = [8, 32], strides = [1, 1]} : vector<8x128xf32> to vector<8x32xf32>
    %302 = vector.extract_strided_slice %298 {offsets = [0, 96], sizes = [8, 32], strides = [1, 1]} : vector<8x128xf32> to vector<8x32xf32>
    %303 = arith.mulf %300, %272 : vector<8x32xf32>
    %304 = arith.mulf %299, %301 : vector<8x32xf32>
    %305 = arith.addf %303, %304 : vector<8x32xf32>
    %306 = math.tanh %305 : vector<8x32xf32>
    %307 = arith.mulf %302, %306 : vector<8x32xf32>
    %cst_160 = arith.constant dense<0.000000e+00> : vector<8x128xf32>
    %308 = tpu.matmul %307, %142, %cst_160 {dimension_numbers = #tpu.dot_dimension_numbers<[1], [0], [0], [1], [0, 0, 1, 1], [], []>} : vector<8x32xf32>, vector<32x128xf32>, vector<8x128xf32> -> vector<8x128xf32>
    %cst_161 = arith.constant dense<0.000000e+00> : vector<8x128xf32>
    %309 = tpu.matmul %291, %143, %cst_161 {dimension_numbers = #tpu.dot_dimension_numbers<[1], [0], [0], [1], [0, 0, 1, 1], [], []>} : vector<8x32xf32>, vector<32x128xf32>, vector<8x128xf32> -> vector<8x128xf32>
    %310 = arith.addf %308, %309 : vector<8x128xf32>
    %311 = arith.addf %310, %146 : vector<8x128xf32>
    %312 = arith.mulf %311, %155 : vector<8x128xf32>
    %313 = math.tanh %312 : vector<8x128xf32>
    %314 = arith.mulf %313, %155 : vector<8x128xf32>
    %315 = arith.addf %314, %158 : vector<8x128xf32>
    %316 = vector.extract_strided_slice %315 {offsets = [0, 0], sizes = [8, 32], strides = [1, 1]} : vector<8x128xf32> to vector<8x32xf32>
    %317 = vector.extract_strided_slice %315 {offsets = [0, 32], sizes = [8, 32], strides = [1, 1]} : vector<8x128xf32> to vector<8x32xf32>
    %318 = vector.extract_strided_slice %315 {offsets = [0, 64], sizes = [8, 32], strides = [1, 1]} : vector<8x128xf32> to vector<8x32xf32>
    %319 = vector.extract_strided_slice %315 {offsets = [0, 96], sizes = [8, 32], strides = [1, 1]} : vector<8x128xf32> to vector<8x32xf32>
    %320 = arith.mulf %317, %289 : vector<8x32xf32>
    %321 = arith.mulf %316, %318 : vector<8x32xf32>
    %322 = arith.addf %320, %321 : vector<8x32xf32>
    %323 = math.tanh %322 : vector<8x32xf32>
    %324 = arith.mulf %319, %323 : vector<8x32xf32>
    %c40_162 = arith.constant 40 : index
    %c0_163 = arith.constant 0 : index
    %325 = vector.load %arg16[%c40_162, %c0_163] : memref<64x128xf32, #tpu.memory_space<vmem>>, vector<8x128xf32>
    %cst_164 = arith.constant dense<0.000000e+00> : vector<8x128xf32>
    %326 = tpu.matmul %307, %141, %cst_164 {dimension_numbers = #tpu.dot_dimension_numbers<[1], [0], [0], [1], [0, 0, 1, 1], [], []>} : vector<8x32xf32>, vector<32x128xf32>, vector<8x128xf32> -> vector<8x128xf32>
    %327 = arith.addf %325, %326 : vector<8x128xf32>
    %328 = arith.mulf %327, %155 : vector<8x128xf32>
    %329 = math.tanh %328 : vector<8x128xf32>
    %330 = arith.mulf %329, %155 : vector<8x128xf32>
    %331 = arith.addf %330, %158 : vector<8x128xf32>
    %332 = vector.extract_strided_slice %331 {offsets = [0, 0], sizes = [8, 32], strides = [1, 1]} : vector<8x128xf32> to vector<8x32xf32>
    %333 = vector.extract_strided_slice %331 {offsets = [0, 32], sizes = [8, 32], strides = [1, 1]} : vector<8x128xf32> to vector<8x32xf32>
    %334 = vector.extract_strided_slice %331 {offsets = [0, 64], sizes = [8, 32], strides = [1, 1]} : vector<8x128xf32> to vector<8x32xf32>
    %335 = vector.extract_strided_slice %331 {offsets = [0, 96], sizes = [8, 32], strides = [1, 1]} : vector<8x128xf32> to vector<8x32xf32>
    %336 = arith.mulf %333, %305 : vector<8x32xf32>
    %337 = arith.mulf %332, %334 : vector<8x32xf32>
    %338 = arith.addf %336, %337 : vector<8x32xf32>
    %339 = math.tanh %338 : vector<8x32xf32>
    %340 = arith.mulf %335, %339 : vector<8x32xf32>
    %cst_165 = arith.constant dense<0.000000e+00> : vector<8x128xf32>
    %341 = tpu.matmul %340, %142, %cst_165 {dimension_numbers = #tpu.dot_dimension_numbers<[1], [0], [0], [1], [0, 0, 1, 1], [], []>} : vector<8x32xf32>, vector<32x128xf32>, vector<8x128xf32> -> vector<8x128xf32>
    %cst_166 = arith.constant dense<0.000000e+00> : vector<8x128xf32>
    %342 = tpu.matmul %324, %143, %cst_166 {dimension_numbers = #tpu.dot_dimension_numbers<[1], [0], [0], [1], [0, 0, 1, 1], [], []>} : vector<8x32xf32>, vector<32x128xf32>, vector<8x128xf32> -> vector<8x128xf32>
    %343 = arith.addf %341, %342 : vector<8x128xf32>
    %344 = arith.addf %343, %146 : vector<8x128xf32>
    %345 = arith.mulf %344, %155 : vector<8x128xf32>
    %346 = math.tanh %345 : vector<8x128xf32>
    %347 = arith.mulf %346, %155 : vector<8x128xf32>
    %348 = arith.addf %347, %158 : vector<8x128xf32>
    %349 = vector.extract_strided_slice %348 {offsets = [0, 0], sizes = [8, 32], strides = [1, 1]} : vector<8x128xf32> to vector<8x32xf32>
    %350 = vector.extract_strided_slice %348 {offsets = [0, 32], sizes = [8, 32], strides = [1, 1]} : vector<8x128xf32> to vector<8x32xf32>
    %351 = vector.extract_strided_slice %348 {offsets = [0, 64], sizes = [8, 32], strides = [1, 1]} : vector<8x128xf32> to vector<8x32xf32>
    %352 = vector.extract_strided_slice %348 {offsets = [0, 96], sizes = [8, 32], strides = [1, 1]} : vector<8x128xf32> to vector<8x32xf32>
    %353 = arith.mulf %350, %322 : vector<8x32xf32>
    %354 = arith.mulf %349, %351 : vector<8x32xf32>
    %355 = arith.addf %353, %354 : vector<8x32xf32>
    %356 = math.tanh %355 : vector<8x32xf32>
    %357 = arith.mulf %352, %356 : vector<8x32xf32>
    %c48_167 = arith.constant 48 : index
    %c0_168 = arith.constant 0 : index
    %358 = vector.load %arg16[%c48_167, %c0_168] : memref<64x128xf32, #tpu.memory_space<vmem>>, vector<8x128xf32>
    %cst_169 = arith.constant dense<0.000000e+00> : vector<8x128xf32>
    %359 = tpu.matmul %340, %141, %cst_169 {dimension_numbers = #tpu.dot_dimension_numbers<[1], [0], [0], [1], [0, 0, 1, 1], [], []>} : vector<8x32xf32>, vector<32x128xf32>, vector<8x128xf32> -> vector<8x128xf32>
    %360 = arith.addf %358, %359 : vector<8x128xf32>
    %361 = arith.mulf %360, %155 : vector<8x128xf32>
    %362 = math.tanh %361 : vector<8x128xf32>
    %363 = arith.mulf %362, %155 : vector<8x128xf32>
    %364 = arith.addf %363, %158 : vector<8x128xf32>
    %365 = vector.extract_strided_slice %364 {offsets = [0, 0], sizes = [8, 32], strides = [1, 1]} : vector<8x128xf32> to vector<8x32xf32>
    %366 = vector.extract_strided_slice %364 {offsets = [0, 32], sizes = [8, 32], strides = [1, 1]} : vector<8x128xf32> to vector<8x32xf32>
    %367 = vector.extract_strided_slice %364 {offsets = [0, 64], sizes = [8, 32], strides = [1, 1]} : vector<8x128xf32> to vector<8x32xf32>
    %368 = vector.extract_strided_slice %364 {offsets = [0, 96], sizes = [8, 32], strides = [1, 1]} : vector<8x128xf32> to vector<8x32xf32>
    %369 = arith.mulf %366, %338 : vector<8x32xf32>
    %370 = arith.mulf %365, %367 : vector<8x32xf32>
    %371 = arith.addf %369, %370 : vector<8x32xf32>
    %372 = math.tanh %371 : vector<8x32xf32>
    %373 = arith.mulf %368, %372 : vector<8x32xf32>
    %cst_170 = arith.constant dense<0.000000e+00> : vector<8x128xf32>
    %374 = tpu.matmul %373, %142, %cst_170 {dimension_numbers = #tpu.dot_dimension_numbers<[1], [0], [0], [1], [0, 0, 1, 1], [], []>} : vector<8x32xf32>, vector<32x128xf32>, vector<8x128xf32> -> vector<8x128xf32>
    %cst_171 = arith.constant dense<0.000000e+00> : vector<8x128xf32>
    %375 = tpu.matmul %357, %143, %cst_171 {dimension_numbers = #tpu.dot_dimension_numbers<[1], [0], [0], [1], [0, 0, 1, 1], [], []>} : vector<8x32xf32>, vector<32x128xf32>, vector<8x128xf32> -> vector<8x128xf32>
    %376 = arith.addf %374, %375 : vector<8x128xf32>
    %377 = arith.addf %376, %146 : vector<8x128xf32>
    %378 = arith.mulf %377, %155 : vector<8x128xf32>
    %379 = math.tanh %378 : vector<8x128xf32>
    %380 = arith.mulf %379, %155 : vector<8x128xf32>
    %381 = arith.addf %380, %158 : vector<8x128xf32>
    %382 = vector.extract_strided_slice %381 {offsets = [0, 0], sizes = [8, 32], strides = [1, 1]} : vector<8x128xf32> to vector<8x32xf32>
    %383 = vector.extract_strided_slice %381 {offsets = [0, 32], sizes = [8, 32], strides = [1, 1]} : vector<8x128xf32> to vector<8x32xf32>
    %384 = vector.extract_strided_slice %381 {offsets = [0, 64], sizes = [8, 32], strides = [1, 1]} : vector<8x128xf32> to vector<8x32xf32>
    %385 = vector.extract_strided_slice %381 {offsets = [0, 96], sizes = [8, 32], strides = [1, 1]} : vector<8x128xf32> to vector<8x32xf32>
    %386 = arith.mulf %383, %355 : vector<8x32xf32>
    %387 = arith.mulf %382, %384 : vector<8x32xf32>
    %388 = arith.addf %386, %387 : vector<8x32xf32>
    %389 = math.tanh %388 : vector<8x32xf32>
    %390 = arith.mulf %385, %389 : vector<8x32xf32>
    %c56_172 = arith.constant 56 : index
    %c0_173 = arith.constant 0 : index
    %391 = vector.load %arg16[%c56_172, %c0_173] : memref<64x128xf32, #tpu.memory_space<vmem>>, vector<8x128xf32>
    %cst_174 = arith.constant dense<0.000000e+00> : vector<8x128xf32>
    %392 = tpu.matmul %373, %141, %cst_174 {dimension_numbers = #tpu.dot_dimension_numbers<[1], [0], [0], [1], [0, 0, 1, 1], [], []>} : vector<8x32xf32>, vector<32x128xf32>, vector<8x128xf32> -> vector<8x128xf32>
    %393 = arith.addf %391, %392 : vector<8x128xf32>
    %394 = arith.mulf %393, %155 : vector<8x128xf32>
    %395 = math.tanh %394 : vector<8x128xf32>
    %396 = arith.mulf %395, %155 : vector<8x128xf32>
    %397 = arith.addf %396, %158 : vector<8x128xf32>
    %398 = vector.extract_strided_slice %397 {offsets = [0, 0], sizes = [8, 32], strides = [1, 1]} : vector<8x128xf32> to vector<8x32xf32>
    %399 = vector.extract_strided_slice %397 {offsets = [0, 32], sizes = [8, 32], strides = [1, 1]} : vector<8x128xf32> to vector<8x32xf32>
    %400 = vector.extract_strided_slice %397 {offsets = [0, 64], sizes = [8, 32], strides = [1, 1]} : vector<8x128xf32> to vector<8x32xf32>
    %401 = vector.extract_strided_slice %397 {offsets = [0, 96], sizes = [8, 32], strides = [1, 1]} : vector<8x128xf32> to vector<8x32xf32>
    %402 = arith.mulf %399, %371 : vector<8x32xf32>
    %403 = arith.mulf %398, %400 : vector<8x32xf32>
    %404 = arith.addf %402, %403 : vector<8x32xf32>
    %405 = math.tanh %404 : vector<8x32xf32>
    %406 = arith.mulf %401, %405 : vector<8x32xf32>
    %cst_175 = arith.constant dense<0.000000e+00> : vector<8x128xf32>
    %407 = tpu.matmul %406, %142, %cst_175 {dimension_numbers = #tpu.dot_dimension_numbers<[1], [0], [0], [1], [0, 0, 1, 1], [], []>} : vector<8x32xf32>, vector<32x128xf32>, vector<8x128xf32> -> vector<8x128xf32>
    %cst_176 = arith.constant dense<0.000000e+00> : vector<8x128xf32>
    %408 = tpu.matmul %390, %143, %cst_176 {dimension_numbers = #tpu.dot_dimension_numbers<[1], [0], [0], [1], [0, 0, 1, 1], [], []>} : vector<8x32xf32>, vector<32x128xf32>, vector<8x128xf32> -> vector<8x128xf32>
    %409 = arith.addf %407, %408 : vector<8x128xf32>
    %410 = arith.addf %409, %146 : vector<8x128xf32>
    %411 = arith.mulf %410, %155 : vector<8x128xf32>
    %412 = math.tanh %411 : vector<8x128xf32>
    %413 = arith.mulf %412, %155 : vector<8x128xf32>
    %414 = arith.addf %413, %158 : vector<8x128xf32>
    %415 = vector.extract_strided_slice %414 {offsets = [0, 0], sizes = [8, 32], strides = [1, 1]} : vector<8x128xf32> to vector<8x32xf32>
    %416 = vector.extract_strided_slice %414 {offsets = [0, 32], sizes = [8, 32], strides = [1, 1]} : vector<8x128xf32> to vector<8x32xf32>
    %417 = vector.extract_strided_slice %414 {offsets = [0, 64], sizes = [8, 32], strides = [1, 1]} : vector<8x128xf32> to vector<8x32xf32>
    %418 = vector.extract_strided_slice %414 {offsets = [0, 96], sizes = [8, 32], strides = [1, 1]} : vector<8x128xf32> to vector<8x32xf32>
    %419 = arith.mulf %416, %388 : vector<8x32xf32>
    %420 = arith.mulf %415, %417 : vector<8x32xf32>
    %421 = arith.addf %419, %420 : vector<8x32xf32>
    %422 = math.tanh %421 : vector<8x32xf32>
    %423 = arith.mulf %418, %422 : vector<8x32xf32>
    %c0_177 = arith.constant 0 : index
    %c0_178 = arith.constant 0 : index
    %424 = vector.load %arg11[%c0_177, %c0_178] : memref<1x32xf32, #tpu.memory_space<vmem>>, vector<1x32xf32>
    %425 = vector.broadcast %424 : vector<1x32xf32> to vector<8x32xf32>
    %426 = arith.mulf %423, %425 : vector<8x32xf32>
    %cst_179 = arith.constant dense<0.000000e+00> : vector<8xf32>
    %427 = vector.multi_reduction <add>, %426, %cst_179 [1] : vector<8x32xf32> to vector<8xf32>
    %428 = vector.shape_cast %427 : vector<8xf32> to vector<8x1xf32>
    %c0_180 = arith.constant 0 : index
    %c0_181 = arith.constant 0 : index
    %429 = vector.load %arg12[%c0_180, %c0_181] : memref<1x1xf32, #tpu.memory_space<vmem>>, vector<1x1xf32>
    %430 = vector.broadcast %429 : vector<1x1xf32> to vector<8x1xf32>
    %431 = arith.addf %428, %430 : vector<8x1xf32>
    %432 = arith.negf %431 : vector<8x1xf32>
    %433 = math.exp %432 : vector<8x1xf32>
    %cst_182 = arith.constant 1.000000e+00 : f32
    %434 = vector.broadcast %cst_182 : f32 to vector<8x1xf32>
    %435 = arith.addf %434, %433 : vector<8x1xf32>
    %436 = arith.divf %434, %435 : vector<8x1xf32>
    %c0_183 = arith.constant 0 : index
    %c0_184 = arith.constant 0 : index
    %437 = vector.load %arg13[%c0_183, %c0_184] : memref<8x1xf32, #tpu.memory_space<vmem>>, vector<8x1xf32>
    tpu.vector_store %arg13[%c0_183, %c0_184], %436 {strides = array<i32>} : memref<8x1xf32, #tpu.memory_space<vmem>>, vector<8x1xf32>,
    return
  }
}

</mosaic_0001>

<bundles_post_ra>
// kernel: tpu_custom_call.1
= control target key start
LH: loop header
LB: loop body
LE: loop exit
PB: predicated region body
PF: predicated region fallthrough
CT: control target
= control target key end

     0   :  { %s2319_s0 = inlined_call_operand.vmem [shape: s32[2,8], index: 0, kind: input, shape index: {}]   ;;  %s2320_s1 = inlined_call_operand.hbm [shape: s32[2,8], index: 1, kind: input, shape index: {}]   ;;  %s2321_s2 = inlined_call_operand.hbm [shape: f32[16,32], index: 2, kind: input, shape index: {}]   ;;  %s2322_s3 = inlined_call_operand.hbm [shape: f32[16,32], index: 3, kind: input, shape index: {}]   ;;  %s2323_s4 = inlined_call_operand.hbm [shape: f32[32,128], index: 4, kind: input, shape index: {}]   ;;  %s2324_s5 = inlined_call_operand.hbm [shape: f32[32,128], index: 5, kind: input, shape index: {}]   ;;  %s2325_s6 = inlined_call_operand.hbm [shape: f32[32,128], index: 6, kind: input, shape index: {}]   ;;  %s2326_s7 = inlined_call_operand.vmem [shape: f32[1,128], index: 7, kind: input, shape index: {}]   ;;  %s2327_s8 = inlined_call_operand.hbm [shape: f32[32,128], index: 8, kind: input, shape index: {}]   ;;  %s2328_s9 = inlined_call_operand.hbm [shape: f32[32,128], index: 9, kind: input, shape index: {}]   ;;  %s2329_s10 = inlined_call_operand.vmem [shape: f32[1,128], index: 10, kind: input, shape index: {}]   ;;  %s2330_s11 = inlined_call_operand.vmem [shape: f32[1,32], index: 11, kind: input, shape index: {}]   ;;  %s2331_s12 = inlined_call_operand.<no memory space> [shape: f32[1,1], index: 12, kind: input, shape index: {}]   ;;  %s2332_s13 = inlined_call_operand.vmem [shape: f32[8,1], index: 13, kind: output, shape index: {}]  }
   0x1   :  { %2333 = sst [smem:[#allocation34_spill]] %s2329_s10  ;;  %v18_v0 = vstv %s2331_s12 }
   0x2   :  { %2334 = sst [smem:[#allocation35_spill]] %s2330_s11  ;;  %19 = vst [vmem:[#allocation5] sm:$0x1] %v18_v0 }
   0x3   :  { %2335 = sst [smem:[#allocation36_spill]] %s2332_s13 }
   0x4   :  { %20 = vsyncpa [#allocation9], 0 }
   0x5   :  { %21 = vsyncpa [#allocation8], 0 }
   0x6   :  { %22 = vsyncpa [#allocation7], 0 }
   0x7   :  { %23 = vsyncpa [#allocation13], 0 }
   0x8   :  { %24 = vsyncpa [#allocation16], 0 }
   0x9   :  { %25 = vsyncpa [#allocation19], 0  ;;  %s61_s29 = sshll.u32 %s2322_s3, 4  ;;  %s1767_s30 = smov [#allocation12]   ;;  %s62_s29 = int_to_ptr.hbm [resolvable:$true] %s61_s29 }
   0xa   :  { %s63_s14 = sshll.u32 %s1767_s30, 4  ;;  %s87_s17 = sshll.u32 %s2324_s5, 4  ;;  %s64_s14 = int_to_ptr.vmem [resolvable:$true] %s63_s14  ;;  %s88_s17 = int_to_ptr.hbm [resolvable:$true] %s87_s17 }
   0xb   :  { %s1768_s12 = smov 128   ;;  %s1769_s18 = smov 8  }
   0xc   :  { %69 = dma.hbm_to_vmem [thread:$0]  %s62_s29, 256, %s64_s14, [#allocation13], %s1768_s12, %s1768_s12, %s1769_s18  }
   0xd   :  { %s1770_s19 = smov [#allocation15]   ;;  %s115_s3 = sshll.u32 %s2327_s8, 4  ;;  %s116_s3 = int_to_ptr.hbm [resolvable:$true] %s115_s3 }
   0xe   :  { %s89_s20 = sshll.u32 %s1770_s19, 4  ;;  %s31_s24 = sshll.u32 %s2319_s0, 4  ;;  %s90_s20 = int_to_ptr.vmem [resolvable:$true] %s89_s20  ;;  %s32_s24 = int_to_ptr.vmem [resolvable:$true] %s31_s24 }
   0xf   :  { %95 = dma.hbm_to_vmem [thread:$0]  %s88_s17, 512, %s90_s20, [#allocation16], %s1768_s12, %s1768_s12, %s1769_s18  }
  0x10   :  { %s1771_s25 = smov [#allocation18]   ;;  %s1772_s27 = smov [#allocation6]  }
  0x11   :  { %s117_s26 = sshll.u32 %s1771_s25, 4  ;;  %s40_s29 = sshll.u32 %s2320_s1, 4  ;;  %s118_s26 = int_to_ptr.vmem [resolvable:$true] %s117_s26  ;;  %s41_s29 = int_to_ptr.hbm [resolvable:$true] %s40_s29 }
  0x12   :  { %123 = dma.hbm_to_vmem [thread:$0]  %s116_s3, 512, %s118_s26, [#allocation19], %s1768_s12, %s1768_s12, %s1769_s18  }
  0x13   :  { %34 = dma.vmem_to_smem %s32_s24, 32, %s1772_s27, [#allocation9]  }
  0x14   :  { %s48_s15 = sshll.u32 %s2321_s2, 4  ;;  %s1773_s0 = smov [#allocation10]   ;;  %s49_s15 = int_to_ptr.hbm [resolvable:$true] %s48_s15 }
  0x15   :  { %43 = dma.hbm_to_smem %s41_s29, 32, %s1773_s0, [#allocation8]  }
  0x16   :  { %s1774_s16 = smov [#allocation11]   ;;  %s74_s21 = sshll.u32 %s2323_s4, 4  ;;  %s75_s21 = int_to_ptr.hbm [resolvable:$true] %s74_s21 }
  0x17   :  { %s50_s17 = sshll.u32 %s1774_s16, 4  ;;  %s100_s3 = sshll.u32 %s2325_s6, 4  ;;  %s51_s17 = int_to_ptr.vmem [resolvable:$true] %s50_s17  ;;  %s101_s3 = int_to_ptr.hbm [resolvable:$true] %s100_s3 }
  0x18   :  { %56 = dma.hbm_to_vmem [thread:$0]  %s49_s15, 256, %s51_s17, [#allocation7], %s1768_s12, %s1768_s12, %s1769_s18  }
  0x19   :  { %s1775_s2 = smov [#allocation14]   ;;  %s1776_s23 = smov [#allocation17]  }
  0x1a   :  { %s76_s5 = sshll.u32 %s1775_s2, 4  ;;  %s102_s4 = sshll.u32 %s1776_s23, 4  ;;  %s77_s5 = int_to_ptr.vmem [resolvable:$true] %s76_s5  ;;  %s103_s4 = int_to_ptr.vmem [resolvable:$true] %s102_s4 }
  0x1b   :  { %82 = dma.hbm_to_vmem [thread:$0]  %s75_s21, 512, %s77_s5, [#allocation13], %s1768_s12, %s1768_s12, %s1769_s18  }
  0x1c   :  { %s128_s26 = sshll.u32 %s2328_s9, 4  ;;  %s1777_s6 = smov [#allocation20]   ;;  %s129_s26 = int_to_ptr.hbm [resolvable:$true] %s128_s26 }
  0x1d   :  { %108 = dma.hbm_to_vmem [thread:$0]  %s101_s3, 512, %s103_s4, [#allocation16], %s1768_s12, %s1768_s12, %s1769_s18  }
  0x1e   :  { %s130_s27 = sshll.u32 %s1777_s6, 4  ;;  %s131_s27 = int_to_ptr.vmem [resolvable:$true] %s130_s27 }
  0x1f   :  { %136 = dma.hbm_to_vmem [thread:$0]  %s129_s26, 512, %s131_s27, [#allocation19], %s1768_s12, %s1768_s12, %s1769_s18  }
  0x20   :  { %1755 = dma.done.wait [#allocation9], 32  }
  0x21   :  { %1756 = vsyncadd [#allocation9], 4294967264 }
  0x22   :  { %1757 = dma.done.wait [#allocation8], 32  }
  0x23   :  { %1758 = vsyncadd [#allocation8], 4294967264 }
  0x24   :  { %1759 = dma.done.wait [#allocation7], 256  }
  0x25   :  { %1760 = vsyncadd [#allocation7], 4294967040 }
  0x26   :  { %1761 = dma.done.wait [#allocation13], 768  }
  0x27   :  { %1762 = vsyncadd [#allocation13], 4294966528 }
  0x28   :  { %1763 = dma.done.wait [#allocation16], 1024  }
  0x29   :  { %1764 = vsyncadd [#allocation16], 4294966272 }
  0x2a   :  { %1765 = dma.done.wait [#allocation19], 1024  }
  0x2b   :  { %1766 = vsyncadd [#allocation19], 4294966272 }
  0x2c   :  { %179 = sfence }
  0x2d   :  { %v185_v1 = vld [vmem:[#allocation14 + $0x18] sm:$0xff]  ;;  %v184_v3 = vld [vmem:[#allocation14 + $0x10] sm:$0xff]  ;;  %v1778_v5 = vmov 0.0   ;;  %v183_v6 = vld [vmem:[#allocation14 + $0x8] sm:$0xff]  ;;  %vm190_vm0 = vcmask 261120   ;;  %s1929_s9 = sld [smem:[#allocation6]]  ;;  %v411_v25 = vlaneseq }
  0x2e   :  { %v227_v2 = vld [vmem:[#allocation15 + $0x18] sm:$0xff]  ;;  %209 = vmatpush.msra.mxu0 %v185_v1  ;;  %v226_v4 = vld [vmem:[#allocation15 + $0x10] sm:$0xff]  ;;  %259 = vst [vmem:[#allocation4] sm:$0xff] %v1778_v5  ;;  %v225_v7 = vld [vmem:[#allocation15 + $0x8] sm:$0xff]  ;;  %s1931_s12 = sld [smem:[#allocation6 + $0x80]]  ;;  %vm1374_vm6 = vcmask 7168  }
  0x2f   :  { %246 = vmatpush.msra.mxu1 %v227_v2  ;;  %260 = vst [vmem:[#allocation4 + $0x8] sm:$0xff] %v1778_v5  ;;  %v182_v8 = vld [vmem:[#allocation14] sm:$0xff]  ;;  %v1907_v10 = vld [vmem:[#allocation17 + $0x18] sm:$0xff]  ;;  %v222_v12 = vld [vmem:[#allocation12] sm:$0xff]  ;;  %s1933_s18 = sld [smem:[#allocation6 + $0x1]]  ;;  %v1998_v28 = vand.u32 127, %v411_v25 }
  0x30   :  { %210 = vmatpush.msra.mxu0 %v184_v3  ;;  %261 = vst [vmem:[#allocation4 + $0x10] sm:$0xff] %v1778_v5  ;;  %v224_v9 = vld [vmem:[#allocation15] sm:$0xff]  ;;  %434 = vmatpush.msra.mxu2 %v1907_v10  ;;  %v1912_v13 = vld [vmem:[#allocation17 + $0x10] sm:$0xff]  ;;  %v1918_v14 = vld [vmem:[#allocation17 + $0x8] sm:$0xff]  ;;  %s1935_s8 = sld [smem:[#allocation6 + $0x81]] }
  0x31   :  { %247 = vmatpush.msra.mxu1 %v226_v4  ;;  %262 = vst [vmem:[#allocation4 + $0x18] sm:$0xff] %v1778_v5  ;;  %v180_v11 = vld [vmem:[#allocation11] sm:$0xff]  ;;  %v181_v16 = vld [vmem:[#allocation11 + $0x8] sm:$0xff]  ;;  %v223_v17 = vld [vmem:[#allocation12 + $0x8] sm:$0xff]  ;;  %s1937_s28 = sld [smem:[#allocation6 + $0x2]]  ;;  %vm413_vm1 = vcmp.ge.s32.totalorder %v1998_v28, 64 }
  0x32   :  { %211 = vmatpush.msra.mxu0 %v183_v6  ;;  %263 = vst [vmem:[#allocation4 + $0x20] sm:$0xff] %v1778_v5  ;;  %435 = vmatpush.msra.mxu2 %v1912_v13  ;;  %v1922_v15 = vld [vmem:[#allocation17] sm:$0xff]  ;;  %s1939_s29 = sld [smem:[#allocation6 + $0x82]]  ;;  %v1491_v18 = vld [vmem:[%s2326_s7] ss:$0 sm:$0xff]  ;;  %vm414_vm2 = vcmp.lt.s32.totalorder %v1998_v28, 96 }
  0x33   :  { %248 = vmatpush.msra.mxu1 %v225_v7  ;;  %264 = vst [vmem:[#allocation4 + $0x28] sm:$0xff] %v1778_v5  ;;  %s1941_s30 = sld [smem:[#allocation6 + $0x3]]  ;;  %vm2029_vm3 = vmand %vm413_vm1, %vm414_vm2 }
  0x34   :  { %212 = vmatpush.msra.mxu0 %v182_v8  ;;  %265 = vst [vmem:[#allocation4 + $0x30] sm:$0xff] %v1778_v5  ;;  %436 = vmatpush.msra.mxu2 %v1918_v14  ;;  %s1943_s14 = sld [smem:[#allocation6 + $0x83]] }
  0x35   :  { %249 = vmatpush.msra.mxu1 %v224_v9  ;;  %1418 = vmatmul.msk.f32.vlgmr.msra.gmra.mxu0 %vm190_vm0, %v180_v11  ;;  %266 = vst [vmem:[#allocation4 + $0x38] sm:$0xff] %v1778_v5  ;;  %s1945_s15 = sld [smem:[#allocation6 + $0x4]]  ;;  %v1779_v9 = vmov 0.5  }
  0x36   :  { %1420 = vmatmul.msk.f32.vlgmr.msra.gmra.mxu1 %vm190_vm0, %v222_v12  ;;  %437 = vmatpush.msra.mxu2 %v1922_v15  ;;  %s1947_s0 = sld [smem:[#allocation6 + $0x84]]  ;;  %v2040_v11 = vsel %vm2029_vm3, 1.0, %v1779_v9 }
  0x37   :  { %438 = vmatmul.f32.vlgmr.msra.gmra.mxu2 %v1778_v5  ;;  %s1949_s16 = sld [smem:[#allocation6 + $0x5]] }
  0x38   :  { %s1951_s17 = sld [smem:[#allocation6 + $0x85]] }
  0x39   :  { %s1953_s19 = sld [smem:[#allocation6 + $0x6]] }
  0x3a   :  { %s1958_s1 = sld [smem:[#allocation6 + $0x86]] }
  0x3b   :  { %s1960_s22 = sld [smem:[#allocation6 + $0x7]] }
  0x3c   :  { %s1962_s3 = sld [smem:[#allocation6 + $0x87]] }
  0x3d   :  { %1419 = vmatmul.msk.f32.gmra.mxu0 %vm190_vm0, %v181_v16  ;;  %s1964_s2 = sld [smem:[#allocation10]] }
  0x3e   :  { %1421 = vmatmul.msk.f32.gmra.mxu1 %vm190_vm0, %v223_v17  ;;  %s1966_s5 = sld [smem:[#allocation10 + $0x80]] }
  0x3f   :  { %s1968_s23 = sld [smem:[#allocation10 + $0x1]] }
  0x40   :  { %2336 = sst [smem:[#allocation27_spill]] %s1958_s1  ;;  %s277_s1 = scalar_lea.vmem [#allocation2], %s1931_s12 }
  0x41   :  { %2337 = sst [smem:[#allocation28_spill]] %s1960_s22  ;;  %s269_s22 = scalar_lea.vmem [#allocation2], %s1929_s9 }
  0x42   :  { %2338 = sst [smem:[#allocation29_spill]] %s1962_s3  ;;  %s301_s9 = scalar_lea.vmem [#allocation2], %s1937_s28 }
  0x43   :  { %s1970_s4 = sld [smem:[#allocation10 + $0x81]]  ;;  %s325_s28 = scalar_lea.vmem [#allocation2], %s1943_s14 }
  0x44   :  { %s1972_s7 = sld [smem:[#allocation10 + $0x2]] }
  0x45   :  { %s1974_s24 = sld [smem:[#allocation10 + $0x82]]  ;;  %s287_s12 = scalar_lea.vmem [#allocation3], %s1968_s23 }
  0x46   :  { %s1976_s25 = sld [smem:[#allocation10 + $0x3]]  ;;  %s365_s23 = scalar_lea.vmem [#allocation2], %s1953_s19 }
  0x47   :  { %s1978_s26 = sld [smem:[#allocation10 + $0x83]] }
  0x48   :  { %s1980_s6 = sld [smem:[#allocation10 + $0x4]] }
  0x49   :  { %s1982_s27 = sld [smem:[#allocation10 + $0x84]] }
  0x4a   :  { %s1984_s20 = sld [smem:[#allocation10 + $0x5]] }
  0x4b   :  { %s1986_s21 = sld [smem:[#allocation10 + $0x85]] }
  0x4c   :  { %s1988_s13 = sld [smem:[#allocation10 + $0x6]] }
  0x4d   :  { %s1990_s11 = sld [smem:[#allocation10 + $0x86]]  ;;  %s327_s14 = scalar_lea.vmem [#allocation3], %s1978_s26 }
  0x4e   :  { %s1992_s10 = sld [smem:[#allocation10 + $0x7]] }
  0x4f   :  { %s1994_s3 = sld [smem:[#allocation10 + $0x87]] }
  0x50   :  { %s351_s26 = scalar_lea.vmem [#allocation3], %s1984_s20 }
  0x51   :  { %2339 = sst [smem:[#allocation30_spill]] %s1986_s21  ;;  %s285_s21 = scalar_lea.vmem [#allocation2], %s1933_s18 }
  0x52   :  { %2340 = sst [smem:[#allocation31_spill]] %s1988_s13  ;;  %s271_s13 = scalar_lea.vmem [#allocation3], %s1964_s2 }
  0x53   :  { %2341 = sst [smem:[#allocation32_spill]] %s1990_s11  ;;  %s293_s11 = scalar_lea.vmem [#allocation2], %s1935_s8 }
  0x54   :  { %s295_s18 = scalar_lea.vmem [#allocation3], %s1970_s4  ;;  %s311_s8 = scalar_lea.vmem [#allocation3], %s1974_s24 }
  0x55   :  { %2342 = sst [smem:[#allocation33_spill]] %s1994_s3  ;;  %s279_s3 = scalar_lea.vmem [#allocation3], %s1966_s5 }
  0x56   :  { %s2343_s2 = sld [smem:[#allocation27_spill]]  ;;  %s335_s5 = scalar_lea.vmem [#allocation3], %s1980_s6 }
  0x57   :  { %s2345_s4 = sld [smem:[#allocation30_spill]] }
  0x5c   :  { %s373_s24 = scalar_lea.vmem [#allocation2], %s2343_s2 }
  0x5d   :  { %s359_s6 = scalar_lea.vmem [#allocation3], %s2345_s4 }
  0xb2   :  { %v214_v19 = vpop.f32.mrf.mxu0 }
  0xb3   :  { %v251_v20 = vpop.f32.mrf.mxu1  ;;  %v215_v21 = vadd.f32 %v1491_v18, %v214_v19 }
  0xb4   :  { %257 = vst [vmem:[#allocation3] sm:$0xff] %v251_v20 }
  0xb5   :  { %220 = vst [vmem:[#allocation2] sm:$0xff] %v215_v21 }
  0xba   :  { %v217_v22 = vpop.f32.mrf.mxu0  ;;  %v439_v2 = vpop.f32.mrf.mxu2 }
  0xbb   :  { %v254_v23 = vpop.f32.mrf.mxu1  ;;  %v218_v24 = vadd.f32 %v1491_v18, %v217_v22 }
  0xbc   :  { %258 = vst [vmem:[#allocation3 + $0x8] sm:$0xff] %v254_v23 }
  0xbd   :  { %221 = vst [vmem:[#allocation2 + $0x8] sm:$0xff] %v218_v24  ;;  %v2047_v24 = vsel %vm2029_vm3, 0.0, %v1779_v9 }
  0xc3   :  { %v272_v30 = vld [vmem:[%s271_s13] sm:$0x1]  ;;  %s303_s13 = scalar_lea.vmem [#allocation3], %s1972_s7  ;;  %s343_s7 = scalar_lea.vmem [#allocation3], %s1982_s27 }
  0xc4   :  { %v270_v26 = vld [vmem:[%s269_s22] sm:$0x1]  ;;  %s341_s22 = scalar_lea.vmem [#allocation2], %s1947_s0  ;;  %s2344_s0 = sld [smem:[#allocation28_spill]] }
  0xc5   :  { %v278_v27 = vld [vmem:[%s277_s1] sm:$0x1]  ;;  %v273_v32 = vadd.f32 %v272_v30, %v270_v26  ;;  %s309_s1 = scalar_lea.vmem [#allocation2], %s1939_s29  ;;  %s333_s29 = scalar_lea.vmem [#allocation2], %s1945_s15 }
  0xc6   :  { %v286_v29 = vld [vmem:[%s285_s21] sm:$0x1]  ;;  %s357_s15 = scalar_lea.vmem [#allocation2], %s1951_s17  ;;  %s2348_s17 = sld [smem:[#allocation32_spill]] }
  0xc7   :  { %v294_v31 = vld [vmem:[%s293_s11] sm:$0x1]  ;;  %s317_s11 = scalar_lea.vmem [#allocation2], %s1941_s30  ;;  %274 = vst [vmem:[#allocation4] sm:$0x1] %v273_v32  ;;  %s319_s30 = scalar_lea.vmem [#allocation3], %s1976_s25 }
  0xc8   :  { %v280_v33 = vld [vmem:[%s279_s3] sm:$0x1]  ;;  %s349_s3 = scalar_lea.vmem [#allocation2], %s1949_s16  ;;  %s2346_s16 = sld [smem:[#allocation29_spill]] }
  0xc9   :  { %v302_v34 = vld [vmem:[%s301_s9] sm:$0x1]  ;;  %v281_v35 = vadd.f32 %v280_v33, %v278_v27  ;;  %s2347_s25 = sld [smem:[#allocation31_spill]] }
  0xca   :  { %v288_v36 = vld [vmem:[%s287_s12] sm:$0x1]  ;;  %s381_s19 = scalar_lea.vmem [#allocation2], %s2344_s0  ;;  %s2351_s21 = sld [smem:[#allocation33_spill]] }
  0xcb   :  { %v310_v37 = vld [vmem:[%s309_s1] sm:$0x1]  ;;  %v289_v38 = vadd.f32 %v288_v36, %v286_v29  ;;  %282 = vst [vmem:[#allocation4 + $0x1] sm:$0x1] %v281_v35  ;;  %s383_s12 = scalar_lea.vmem [#allocation3], %s1992_s10  ;;  %s1780_s10 = smov 64  }
  0xcc   :  { %v296_v39 = vld [vmem:[%s295_s18] sm:$0x1]  ;;  %s375_s9 = scalar_lea.vmem [#allocation3], %s2348_s17  ;;  %s1781_s18 = smov 32   ;;  %v2064_v36 = vld [vmem:[#allocation18 + $0x10] sm:$0xff] }
  0xcd   :  { %v318_v40 = vld [vmem:[%s317_s11] sm:$0x1]  ;;  %v297_v41 = vadd.f32 %v296_v39, %v294_v31  ;;  %290 = vst [vmem:[#allocation4 + $0x8] sm:$0x1] %v289_v38  ;;  %v2072_v38 = vld [vmem:[#allocation18 + $0x8] sm:$0xff]  ;;  %v2075_v39 = vld [vmem:[#allocation20] sm:$0xff] }
  0xce   :  { %v304_v42 = vld [vmem:[%s303_s13] sm:$0x1]  ;;  %s389_s27 = scalar_lea.vmem [#allocation2], %s2346_s16 }
  0xcf   :  { %v312_v43 = vld [vmem:[%s311_s8] sm:$0x1]  ;;  %v305_v46 = vadd.f32 %v304_v42, %v302_v34  ;;  %298 = vst [vmem:[#allocation4 + $0x9] sm:$0x1] %v297_v41  ;;  %s367_s20 = scalar_lea.vmem [#allocation3], %s2347_s25  ;;  %v2059_v34 = vld [vmem:[#allocation20 + $0x10] sm:$0xff] }
  0xd0   :  { %v326_v44 = vld [vmem:[%s325_s28] sm:$0x1]  ;;  %v313_v48 = vadd.f32 %v312_v43, %v310_v37  ;;  %s391_s1 = scalar_lea.vmem [#allocation3], %s2351_s21  ;;  %v2067_v37 = vld [vmem:[#allocation20 + $0x8] sm:$0xff]  ;;  %s2352_s8 = sld [smem:[#allocation34_spill]] }
  0xd1   :  { %v334_v45 = vld [vmem:[%s333_s29] sm:$0x1]  ;;  %306 = vst [vmem:[#allocation4 + $0x10] sm:$0x1] %v305_v46 }
  0xd2   :  { %v342_v47 = vld [vmem:[%s341_s22] sm:$0x1]  ;;  %314 = vst [vmem:[#allocation4 + $0x11] sm:$0x1] %v313_v48  ;;  %s2353_s22 = sld [smem:[#allocation35_spill]] }
  0xd3   :  { %v320_v49 = vld [vmem:[%s319_s30] sm:$0x1]  ;;  %s1782_s30 = smov 96  }
  0xd4   :  { %v350_v50 = vld [vmem:[%s349_s3] sm:$0x1]  ;;  %v321_v51 = vadd.f32 %v320_v49, %v318_v40  ;;  %v2080_v40 = vld [vmem:[#allocation18] sm:$0xff] }
  0xd5   :  { %v328_v52 = vld [vmem:[%s327_s14] sm:$0x1]  ;;  %s2354_s14 = sld [smem:[#allocation36_spill]] }
  0xd6   :  { %v358_v53 = vld [vmem:[%s357_s15] sm:$0x1]  ;;  %v329_v54 = vadd.f32 %v328_v52, %v326_v44  ;;  %322 = vst [vmem:[#allocation4 + $0x18] sm:$0x1] %v321_v51  ;;  %v531_v48 = vld [vmem:[#allocation4 + $0x8] sm:$0xff] }
  0xd7   :  { %v336_v55 = vld [vmem:[%s335_s5] sm:$0x1] }
  0xd8   :  { %v366_v56 = vld [vmem:[%s365_s23] sm:$0x1]  ;;  %v337_v57 = vadd.f32 %v336_v55, %v334_v45  ;;  %330 = vst [vmem:[#allocation4 + $0x19] sm:$0x1] %v329_v54 }
  0xd9   :  { %v344_v58 = vld [vmem:[%s343_s7] sm:$0x1] }
  0xda   :  { %v374_v59 = vld [vmem:[%s373_s24] sm:$0x1]  ;;  %v345_v60 = vadd.f32 %v344_v58, %v342_v47  ;;  %338 = vst [vmem:[#allocation4 + $0x20] sm:$0x1] %v337_v57 }
  0xdb   :  { %v352_v61 = vld [vmem:[%s351_s26] sm:$0x1] }
  0xdc   :  { %v382_v63 = vld [vmem:[%s381_s19] sm:$0x1]  ;;  %v353_v0 = vadd.f32 %v352_v61, %v350_v50  ;;  %346 = vst [vmem:[#allocation4 + $0x21] sm:$0x1] %v345_v60 }
  0xdd   :  { %v360_v1 = vld [vmem:[%s359_s6] sm:$0x1] }
  0xde   :  { %v390_v3 = vld [vmem:[%s389_s27] sm:$0x1]  ;;  %v361_v4 = vadd.f32 %v360_v1, %v358_v53  ;;  %354 = vst [vmem:[#allocation4 + $0x28] sm:$0x1] %v353_v0 }
  0xdf   :  { %v368_v6 = vld [vmem:[%s367_s20] sm:$0x1] }
  0xe0   :  { %v369_v7 = vadd.f32 %v368_v6, %v366_v56  ;;  %v376_v8 = vld [vmem:[%s375_s9] sm:$0x1]  ;;  %362 = vst [vmem:[#allocation4 + $0x29] sm:$0x1] %v361_v4 }
  0xe1   :  { %v418_v12 = vld [vmem:[#allocation4] sm:$0xff]  ;;  %v377_v16 = vadd.f32 %v376_v8, %v374_v59 }
  0xe2   :  { %v384_v17 = vld [vmem:[%s383_s12] sm:$0x1]  ;;  %v442_v18 = vadd.f32 %v439_v2, %v418_v12  ;;  %370 = vst [vmem:[#allocation4 + $0x30] sm:$0x1] %v369_v7 }
  0xe3   :  { %v385_v19 = vadd.f32 %v384_v17, %v382_v63  ;;  %v392_v20 = vld [vmem:[%s391_s1] sm:$0x1]  ;;  %378 = vst [vmem:[#allocation4 + $0x31] sm:$0x1] %v377_v16 }
  0xe4   :  { %v393_v21 = vadd.f32 %v392_v20, %v390_v3  ;;  %v443_v22 = vmul.f32 %v442_v18, %v2040_v11  ;;  %v2057_v33 = vld [vmem:[#allocation20 + $0x18] sm:$0xff] }
  0xe5   :  { %386 = vst [vmem:[#allocation4 + $0x38] sm:$0x1] %v385_v19  ;;  %476 = vmatpush.msra.mxu3 %v2057_v33  ;;  %v2062_v35 = vld [vmem:[#allocation18 + $0x18] sm:$0xff]  ;;  %591 = vmatpush.msrb.mxu0 %v2057_v33 }
  0xe6   :  { %1495 = vtanh.f32 %v443_v22  ;;  %394 = vst [vmem:[#allocation4 + $0x39] sm:$0x1] %v393_v21  ;;  %501 = vmatpush.msrb.mxu2 %v2062_v35  ;;  %616 = vmatpush.msrb.mxu1 %v2062_v35  ;;  %v2124_v44 = vld [vmem:[%s2352_s8] ss:$0 sm:$0xff] }
  0xe7   :  { %477 = vmatpush.msra.mxu3 %v2059_v34  ;;  %592 = vmatpush.msrb.mxu0 %v2059_v34 }
  0xe8   :  { %502 = vmatpush.msrb.mxu2 %v2064_v36  ;;  %617 = vmatpush.msrb.mxu1 %v2064_v36 }
  0xe9   :  { %478 = vmatpush.msra.mxu3 %v2067_v37  ;;  %593 = vmatpush.msrb.mxu0 %v2067_v37 }
  0xea   :  { %503 = vmatpush.msrb.mxu2 %v2072_v38  ;;  %618 = vmatpush.msrb.mxu1 %v2072_v38 }
  0xeb   :  { %479 = vmatpush.msra.mxu3 %v2075_v39  ;;  %594 = vmatpush.msrb.mxu0 %v2075_v39 }
  0xec   :  { %v1496_v23 = vpop.eup %1495  ;;  %480 = vmatmul.f32.vlgmr.msra.gmra.mxu3 %v1778_v5  ;;  %504 = vmatpush.msrb.mxu2 %v2080_v40 }
  0xed   :  { %v445_v25 = vmul.f32 %v1496_v23, %v2040_v11  ;;  %544 = vmatpush.msrb.mxu3 %v1907_v10  ;;  %619 = vmatpush.msrb.mxu1 %v2080_v40 }
  0xee   :  { %659 = vmatpush.msra.mxu2 %v1907_v10  ;;  %731 = vmatpush.msra.mxu0 %v2062_v35 }
  0xef   :  { %v446_v26 = vadd.f32 %v445_v25, %v2047_v24  ;;  %545 = vmatpush.msrb.mxu3 %v1912_v13  ;;  %774 = vmatpush.msra.mxu1 %v1907_v10  ;;  %v646_v25 = vld [vmem:[#allocation4 + $0x10] sm:$0xff] }
  0xf0   :  { %660 = vmatpush.msra.mxu2 %v1912_v13  ;;  %732 = vmatpush.msra.mxu0 %v2064_v36 }
  0xf1   :  { %449 = vrot.lane.b32.xlu0 %v446_v26, %s1780_s10  ;;  %v447_v29 = vmul.f32 0.0, %v446_v26  ;;  %546 = vmatpush.msrb.mxu3 %v1918_v14 }
  0xf2   :  { %661 = vmatpush.msra.mxu2 %v1918_v14  ;;  %775 = vmatpush.msra.mxu1 %v1912_v13 }
  0xf3   :  { %733 = vmatpush.msra.mxu0 %v2072_v38  ;;  %547 = vmatpush.msrb.mxu3 %v1922_v15 }
  0xf4   :  { %662 = vmatpush.msra.mxu2 %v1922_v15  ;;  %776 = vmatpush.msra.mxu1 %v1918_v14 }
  0xf5   :  { %706 = vmatpush.msra.mxu3 %v2057_v33  ;;  %734 = vmatpush.msra.mxu0 %v2080_v40 }
  0xf6   :  { %777 = vmatpush.msra.mxu1 %v1922_v15 }
  0xf7   :  { %707 = vmatpush.msra.mxu3 %v2059_v34 }
  0xf9   :  { %708 = vmatpush.msra.mxu3 %v2067_v37 }
  0xfb   :  { %709 = vmatpush.msra.mxu3 %v2075_v39 }
 0x163   :  { %v450_v27 = vpop.permute.xlu0 %449 }
 0x164   :  { %v452_v28 = vmul.f32 %v450_v27, %v446_v26 }
 0x166   :  { %454 = vrot.lane.b32.xlu0 %v452_v28, %s1781_s18 }
 0x16f   :  { %v481_v43 = vpop.f32.mrf.mxu3 }
 0x1d8   :  { %v455_v30 = vpop.permute.xlu0 %454 }
 0x1d9   :  { %v2053_v31 = vadd.f32 %v455_v30, %v447_v29 }
 0x1db   :  { %1497 = vtanh.f32 %v2053_v31 }
 0x1e1   :  { %v1498_v32 = vpop.eup %1497 }
 0x1e2   :  { %460 = vrot.lane.b32.xlu1 %v1498_v32, %s1780_s10 }
 0x254   :  { %v461_v5 = vpop.permute.xlu1 %460 }
 0x255   :  { %v463_v41 = vmul.f32 %v461_v5, %v446_v26 }
 0x257   :  { %485 = vrot.lane.b32.xlu1 %v463_v41, %s1781_s18 }
 0x2c9   :  { %v486_v42 = vpop.permute.xlu1 %485 }
 0x2ca   :  { %1452 = vmatmul.msk.f32.vlgmr.msrb.gmra.mxu2 %vm190_vm0, %v486_v42  ;;  %1453 = vmatmul.msk.f32.vlgmr.msrb.gmra.mxu3 %vm190_vm0, %v486_v42 }
 0x2cb   :  { %821 = vmatpush.msrb.mxu2 %v2057_v33  ;;  %846 = vmatpush.msrb.mxu3 %v2062_v35 }
 0x2cd   :  { %822 = vmatpush.msrb.mxu2 %v2059_v34  ;;  %847 = vmatpush.msrb.mxu3 %v2064_v36 }
 0x2cf   :  { %823 = vmatpush.msrb.mxu2 %v2067_v37  ;;  %848 = vmatpush.msrb.mxu3 %v2072_v38 }
 0x2d1   :  { %824 = vmatpush.msrb.mxu2 %v2075_v39  ;;  %849 = vmatpush.msrb.mxu3 %v2080_v40 }
 0x34d   :  { %v506_v45 = vpop.f32.mrf.mxu2  ;;  %v549_v46 = vpop.f32.mrf.mxu3 }
 0x34e   :  { %v507_v47 = vadd.f32 %v506_v45, %v481_v43  ;;  %v552_v50 = vadd.f32 %v549_v46, %v531_v48 }
 0x350   :  { %v509_v49 = vadd.f32 %v2124_v44, %v507_v47  ;;  %v553_v52 = vmul.f32 %v552_v50, %v2040_v11 }
 0x352   :  { %v510_v51 = vmul.f32 %v509_v49, %v2040_v11 }
 0x354   :  { %1499 = vtanh.f32 %v510_v51 }
 0x355   :  { %1501 = vtanh.f32 %v553_v52 }
 0x35a   :  { %v1500_v53 = vpop.eup %1499 }
 0x35b   :  { %v512_v54 = vmul.f32 %v1500_v53, %v2040_v11  ;;  %v1502_v56 = vpop.eup %1501 }
 0x35c   :  { %v555_v57 = vmul.f32 %v1502_v56, %v2040_v11 }
 0x35d   :  { %v513_v55 = vadd.f32 %v512_v54, %v2047_v24 }
 0x35e   :  { %v556_v58 = vadd.f32 %v555_v57, %v2047_v24 }
 0x35f   :  { %516 = vrot.lane.b32.xlu2 %v513_v55, %s1780_s10  ;;  %v514_v63 = vmul.f32 0.0, %v513_v55 }
 0x360   :  { %v557_v2 = vmul.f32 %v556_v58, %v2053_v31 }
 0x367   :  { %559 = vrot.lane.b32.xlu2 %v556_v58, %s1780_s10 }
 0x3b9   :  { %v517_v59 = vpop.permute.xlu2 %516 }
 0x3ba   :  { %v519_v60 = vmul.f32 %v517_v59, %v513_v55 }
 0x3bc   :  { %521 = vrot.lane.b32.xlu0 %v519_v60, %s1781_s18 }
 0x3c1   :  { %v560_v61 = vpop.permute.xlu2 %559 }
 0x3c2   :  { %v562_v62 = vmul.f32 %v560_v61, %v556_v58  ;;  %v761_v61 = vld [vmem:[#allocation4 + $0x18] sm:$0xff] }
 0x3c4   :  { %564 = vrot.lane.b32.xlu1 %v562_v62, %s1781_s18 }
 0x42e   :  { %v522_v0 = vpop.permute.xlu0 %521 }
 0x42f   :  { %v524_v1 = vadd.f32 %v522_v0, %v514_v63 }
 0x431   :  { %1503 = vtanh.f32 %v524_v1 }
 0x436   :  { %v565_v3 = vpop.permute.xlu1 %564 }
 0x437   :  { %v1504_v4 = vpop.eup %1503  ;;  %v567_v6 = vadd.f32 %v565_v3, %v557_v2 }
 0x438   :  { %527 = vrot.lane.b32.xlu2 %v1504_v4, %s1780_s10 }
 0x439   :  { %1505 = vtanh.f32 %v567_v6 }
 0x43f   :  { %v1506_v7 = vpop.eup %1505 }
 0x440   :  { %570 = vrot.lane.b32.xlu0 %v1506_v7, %s1780_s10 }
 0x492   :  { %v528_v8 = vpop.permute.xlu2 %527 }
 0x493   :  { %v530_v9 = vmul.f32 %v528_v8, %v513_v55 }
 0x495   :  { %575 = vrot.lane.b32.xlu1 %v530_v9, %s1781_s18 }
 0x4b2   :  { %v571_v12 = vpop.permute.xlu0 %570 }
 0x4b3   :  { %v573_v16 = vmul.f32 %v571_v12, %v556_v58 }
 0x4b5   :  { %600 = vrot.lane.b32.xlu2 %v573_v16, %s1781_s18 }
 0x507   :  { %v576_v17 = vpop.permute.xlu1 %575 }
 0x508   :  { %1454 = vmatmul.msk.f32.vlgmr.msrb.gmra.mxu0 %vm190_vm0, %v576_v17 }
 0x509   :  { %889 = vmatpush.msrb.mxu0 %v1907_v10 }
 0x50b   :  { %890 = vmatpush.msrb.mxu0 %v1912_v13 }
 0x50d   :  { %891 = vmatpush.msrb.mxu0 %v1918_v14 }
 0x50f   :  { %v601_v18 = vpop.permute.xlu2 %600  ;;  %892 = vmatpush.msrb.mxu0 %v1922_v15 }
 0x510   :  { %1455 = vmatmul.msk.f32.vlgmr.msrb.gmra.mxu1 %vm190_vm0, %v601_v18  ;;  %1456 = vmatmul.msk.f32.vlgmr.msra.gmra.mxu2 %vm190_vm0, %v601_v18 }
 0x511   :  { %936 = vmatpush.msrb.mxu1 %v2057_v33  ;;  %961 = vmatpush.msra.mxu2 %v2062_v35 }
 0x513   :  { %937 = vmatpush.msrb.mxu1 %v2059_v34  ;;  %962 = vmatpush.msra.mxu2 %v2064_v36 }
 0x515   :  { %938 = vmatpush.msrb.mxu1 %v2067_v37  ;;  %963 = vmatpush.msra.mxu2 %v2072_v38 }
 0x517   :  { %939 = vmatpush.msrb.mxu1 %v2075_v39  ;;  %964 = vmatpush.msra.mxu2 %v2080_v40 }
 0x585   :  { %v596_v19 = vpop.f32.mrf.mxu0 }
 0x58d   :  { %v621_v20 = vpop.f32.mrf.mxu1 }
 0x58e   :  { %v622_v21 = vadd.f32 %v621_v20, %v596_v19 }
 0x590   :  { %v624_v22 = vadd.f32 %v2124_v44, %v622_v21 }
 0x592   :  { %v625_v23 = vmul.f32 %v624_v22, %v2040_v11 }
 0x593   :  { %v664_v26 = vpop.f32.mrf.mxu2 }
 0x594   :  { %1507 = vtanh.f32 %v625_v23  ;;  %v667_v27 = vadd.f32 %v664_v26, %v646_v25 }
 0x596   :  { %v668_v28 = vmul.f32 %v667_v27, %v2040_v11 }
 0x598   :  { %1509 = vtanh.f32 %v668_v28 }
 0x59a   :  { %v1508_v29 = vpop.eup %1507 }
 0x59b   :  { %v627_v30 = vmul.f32 %v1508_v29, %v2040_v11 }
 0x59d   :  { %v628_v31 = vadd.f32 %v627_v30, %v2047_v24 }
 0x59e   :  { %v1510_v32 = vpop.eup %1509 }
 0x59f   :  { %631 = vrot.lane.b32.xlu0 %v628_v31, %s1780_s10  ;;  %v670_v5 = vmul.f32 %v1510_v32, %v2040_v11  ;;  %v629_v47 = vmul.f32 %v628_v31, %v524_v1 }
 0x5a1   :  { %v671_v41 = vadd.f32 %v670_v5, %v2047_v24 }
 0x5a3   :  { %674 = vrot.lane.b32.xlu1 %v671_v41, %s1780_s10  ;;  %v672_v51 = vmul.f32 %v671_v41, %v567_v6 }
 0x611   :  { %v632_v42 = vpop.permute.xlu0 %631 }
 0x612   :  { %v634_v43 = vmul.f32 %v632_v42, %v628_v31 }
 0x614   :  { %636 = vrot.lane.b32.xlu2 %v634_v43, %s1781_s18 }
 0x615   :  { %v675_v45 = vpop.permute.xlu1 %674 }
 0x616   :  { %v677_v46 = vmul.f32 %v675_v45, %v671_v41  ;;  %v876_v45 = vld [vmem:[#allocation4 + $0x20] sm:$0xff] }
 0x618   :  { %679 = vrot.lane.b32.xlu0 %v677_v46, %s1781_s18 }
 0x66e   :  { %v637_v48 = vpop.permute.xlu2 %636 }
 0x66f   :  { %v639_v49 = vadd.f32 %v637_v48, %v629_v47 }
 0x671   :  { %1511 = vtanh.f32 %v639_v49 }
 0x677   :  { %v1512_v50 = vpop.eup %1511 }
 0x678   :  { %642 = vrot.lane.b32.xlu1 %v1512_v50, %s1780_s10 }
 0x68a   :  { %v680_v52 = vpop.permute.xlu0 %679 }
 0x68b   :  { %v682_v53 = vadd.f32 %v680_v52, %v672_v51 }
 0x68d   :  { %1513 = vtanh.f32 %v682_v53 }
 0x693   :  { %v1514_v54 = vpop.eup %1513 }
 0x694   :  { %685 = vrot.lane.b32.xlu2 %v1514_v54, %s1780_s10 }
 0x6ea   :  { %v643_v55 = vpop.permute.xlu1 %642 }
 0x6eb   :  { %v645_v56 = vmul.f32 %v643_v55, %v628_v31 }
 0x6ed   :  { %690 = vrot.lane.b32.xlu0 %v645_v56, %s1781_s18 }
 0x6ee   :  { %v686_v57 = vpop.permute.xlu2 %685 }
 0x6ef   :  { %v688_v58 = vmul.f32 %v686_v57, %v671_v41 }
 0x6f1   :  { %715 = vrot.lane.b32.xlu1 %v688_v58, %s1781_s18 }
 0x75f   :  { %v691_v59 = vpop.permute.xlu0 %690 }
 0x760   :  { %1457 = vmatmul.msk.f32.vlgmr.msra.gmra.mxu3 %vm190_vm0, %v691_v59 }
 0x761   :  { %1004 = vmatpush.msra.mxu3 %v1907_v10 }
 0x763   :  { %v716_v60 = vpop.permute.xlu1 %715  ;;  %1005 = vmatpush.msra.mxu3 %v1912_v13 }
 0x764   :  { %1458 = vmatmul.msk.f32.vlgmr.msra.gmra.mxu0 %vm190_vm0, %v716_v60  ;;  %1459 = vmatmul.msk.f32.vlgmr.msra.gmra.mxu1 %vm190_vm0, %v716_v60 }
 0x765   :  { %1006 = vmatpush.msra.mxu3 %v1918_v14  ;;  %1076 = vmatpush.msra.mxu1 %v2062_v35 }
 0x766   :  { %1051 = vmatpush.msra.mxu0 %v2057_v33 }
 0x767   :  { %1007 = vmatpush.msra.mxu3 %v1922_v15  ;;  %1077 = vmatpush.msra.mxu1 %v2064_v36 }
 0x768   :  { %1052 = vmatpush.msra.mxu0 %v2059_v34 }
 0x769   :  { %1078 = vmatpush.msra.mxu1 %v2072_v38 }
 0x76a   :  { %1053 = vmatpush.msra.mxu0 %v2067_v37 }
 0x76b   :  { %1079 = vmatpush.msra.mxu1 %v2080_v40 }
 0x76c   :  { %1054 = vmatpush.msra.mxu0 %v2075_v39 }
 0x7e1   :  { %v779_v62 = vpop.f32.mrf.mxu1  ;;  %v736_v0 = vpop.f32.mrf.mxu0 }
 0x7e2   :  { %v782_v63 = vadd.f32 %v779_v62, %v761_v61 }
 0x7e3   :  { %v711_v1 = vpop.f32.mrf.mxu3 }
 0x7e4   :  { %v783_v2 = vmul.f32 %v782_v63, %v2040_v11  ;;  %v737_v3 = vadd.f32 %v736_v0, %v711_v1 }
 0x7e6   :  { %1515 = vtanh.f32 %v783_v2  ;;  %v739_v4 = vadd.f32 %v2124_v44, %v737_v3 }
 0x7e8   :  { %v740_v6 = vmul.f32 %v739_v4, %v2040_v11 }
 0x7ea   :  { %1517 = vtanh.f32 %v740_v6 }
 0x7ec   :  { %v1516_v7 = vpop.eup %1515 }
 0x7ed   :  { %v785_v8 = vmul.f32 %v1516_v7, %v2040_v11 }
 0x7ef   :  { %v786_v9 = vadd.f32 %v785_v8, %v2047_v24 }
 0x7f0   :  { %v1518_v12 = vpop.eup %1517 }
 0x7f1   :  { %789 = vrot.lane.b32.xlu0 %v786_v9, %s1780_s10  ;;  %v742_v16 = vmul.f32 %v1518_v12, %v2040_v11  ;;  %v787_v22 = vmul.f32 %v786_v9, %v682_v53 }
 0x7f3   :  { %v743_v17 = vadd.f32 %v742_v16, %v2047_v24 }
 0x7f5   :  { %746 = vrot.lane.b32.xlu2 %v743_v17, %s1780_s10  ;;  %v744_v26 = vmul.f32 %v743_v17, %v639_v49 }
 0x84f   :  { %v747_v18 = vpop.permute.xlu2 %746 }
 0x850   :  { %v749_v19 = vmul.f32 %v747_v18, %v743_v17 }
 0x852   :  { %751 = vrot.lane.b32.xlu1 %v749_v19, %s1781_s18 }
 0x863   :  { %v790_v20 = vpop.permute.xlu0 %789 }
 0x864   :  { %v792_v21 = vmul.f32 %v790_v20, %v786_v9 }
 0x866   :  { %794 = vrot.lane.b32.xlu2 %v792_v21, %s1781_s18 }
 0x8c0   :  { %v795_v23 = vpop.permute.xlu2 %794 }
 0x8c1   :  { %v2198_v25 = vadd.f32 %v795_v23, %v787_v22 }
 0x8c3   :  { %1519 = vtanh.f32 %v2198_v25 }
 0x8c4   :  { %v752_v27 = vpop.permute.xlu1 %751 }
 0x8c5   :  { %v754_v28 = vadd.f32 %v752_v27, %v744_v26 }
 0x8c7   :  { %1521 = vtanh.f32 %v754_v28 }
 0x8c9   :  { %v1520_v29 = vpop.eup %1519 }
 0x8ca   :  { %800 = vrot.lane.b32.xlu1 %v1520_v29, %s1780_s10 }
 0x8cd   :  { %v1522_v30 = vpop.eup %1521 }
 0x8ce   :  { %757 = vrot.lane.b32.xlu0 %v1522_v30, %s1780_s10 }
 0x93c   :  { %v801_v31 = vpop.permute.xlu1 %800 }
 0x93d   :  { %v803_v32 = vmul.f32 %v801_v31, %v786_v9 }
 0x93f   :  { %830 = vrot.lane.b32.xlu0 %v803_v32, %s1781_s18 }
 0x940   :  { %v758_v5 = vpop.permute.xlu0 %757 }
 0x941   :  { %v760_v41 = vmul.f32 %v758_v5, %v743_v17 }
 0x943   :  { %805 = vrot.lane.b32.xlu2 %v760_v41, %s1781_s18 }
 0x99d   :  { %v806_v42 = vpop.permute.xlu2 %805 }
 0x99e   :  { %1460 = vmatmul.msk.f32.vlgmr.msrb.gmra.mxu2 %vm190_vm0, %v806_v42 }
 0x99f   :  { %1119 = vmatpush.msrb.mxu2 %v1907_v10 }
 0x9a1   :  { %1120 = vmatpush.msrb.mxu2 %v1912_v13 }
 0x9a3   :  { %1121 = vmatpush.msrb.mxu2 %v1918_v14 }
 0x9a5   :  { %1122 = vmatpush.msrb.mxu2 %v1922_v15 }
 0x9b1   :  { %v831_v43 = vpop.permute.xlu0 %830 }
 0x9b2   :  { %1461 = vmatmul.msk.f32.vlgmr.msrb.gmra.mxu3 %vm190_vm0, %v831_v43  ;;  %1462 = vmatmul.msk.f32.vlgmr.msrb.gmra.mxu0 %vm190_vm0, %v831_v43 }
 0x9b3   :  { %1166 = vmatpush.msrb.mxu3 %v2057_v33  ;;  %1191 = vmatpush.msrb.mxu0 %v2062_v35 }
 0x9b5   :  { %1167 = vmatpush.msrb.mxu3 %v2059_v34  ;;  %1192 = vmatpush.msrb.mxu0 %v2064_v36 }
 0x9b7   :  { %1168 = vmatpush.msrb.mxu3 %v2067_v37  ;;  %1193 = vmatpush.msrb.mxu0 %v2072_v38 }
 0x9b9   :  { %1169 = vmatpush.msrb.mxu3 %v2075_v39  ;;  %1194 = vmatpush.msrb.mxu0 %v2080_v40 }
 0xa21   :  { %v826_v49 = vpop.f32.mrf.mxu2 }
 0xa2f   :  { %v894_v46 = vpop.f32.mrf.mxu0 }
 0xa30   :  { %v897_v47 = vadd.f32 %v894_v46, %v876_v45 }
 0xa32   :  { %v898_v48 = vmul.f32 %v897_v47, %v2040_v11 }
 0xa34   :  { %1523 = vtanh.f32 %v898_v48 }
 0xa35   :  { %v851_v50 = vpop.f32.mrf.mxu3 }
 0xa36   :  { %v852_v51 = vadd.f32 %v851_v50, %v826_v49 }
 0xa38   :  { %v854_v52 = vadd.f32 %v2124_v44, %v852_v51 }
 0xa3a   :  { %v1524_v53 = vpop.eup %1523  ;;  %v855_v54 = vmul.f32 %v854_v52, %v2040_v11 }
 0xa3b   :  { %v900_v55 = vmul.f32 %v1524_v53, %v2040_v11 }
 0xa3c   :  { %1525 = vtanh.f32 %v855_v54  ;;  %v1106_v54 = vld [vmem:[#allocation4 + $0x30] sm:$0xff] }
 0xa3d   :  { %v901_v56 = vadd.f32 %v900_v55, %v2047_v24 }
 0xa3f   :  { %904 = vrot.lane.b32.xlu1 %v901_v56, %s1780_s10  ;;  %v902_v4 = vmul.f32 %v901_v56, %v2198_v25 }
 0xa42   :  { %v1526_v57 = vpop.eup %1525 }
 0xa43   :  { %v857_v58 = vmul.f32 %v1526_v57, %v2040_v11 }
 0xa45   :  { %v858_v59 = vadd.f32 %v857_v58, %v2047_v24 }
 0xa47   :  { %861 = vrot.lane.b32.xlu2 %v858_v59, %s1780_s10  ;;  %v859_v0 = vmul.f32 %v858_v59, %v754_v28 }
 0xaa1   :  { %v862_v60 = vpop.permute.xlu2 %861 }
 0xaa2   :  { %v864_v61 = vmul.f32 %v862_v60, %v858_v59 }
 0xaa4   :  { %866 = vrot.lane.b32.xlu1 %v864_v61, %s1781_s18 }
 0xab1   :  { %v905_v62 = vpop.permute.xlu1 %904 }
 0xab2   :  { %v907_v63 = vmul.f32 %v905_v62, %v901_v56 }
 0xab4   :  { %909 = vrot.lane.b32.xlu0 %v907_v63, %s1781_s18 }
 0xb16   :  { %v867_v1 = vpop.permute.xlu1 %866 }
 0xb17   :  { %v869_v2 = vadd.f32 %v867_v1, %v859_v0 }
 0xb19   :  { %1527 = vtanh.f32 %v869_v2 }
 0xb1f   :  { %v1528_v3 = vpop.eup %1527 }
 0xb20   :  { %872 = vrot.lane.b32.xlu0 %v1528_v3, %s1780_s10 }
 0xb26   :  { %v910_v6 = vpop.permute.xlu0 %909 }
 0xb27   :  { %v912_v7 = vadd.f32 %v910_v6, %v902_v4 }
 0xb29   :  { %1529 = vtanh.f32 %v912_v7 }
 0xb2f   :  { %v1530_v8 = vpop.eup %1529 }
 0xb30   :  { %915 = vrot.lane.b32.xlu2 %v1530_v8, %s1780_s10 }
 0xb8a   :  { %v916_v9 = vpop.permute.xlu2 %915 }
 0xb8b   :  { %v918_v12 = vmul.f32 %v916_v9, %v901_v56 }
 0xb8d   :  { %945 = vrot.lane.b32.xlu1 %v918_v12, %s1781_s18 }
 0xb92   :  { %v873_v16 = vpop.permute.xlu0 %872 }
 0xb93   :  { %v875_v17 = vmul.f32 %v873_v16, %v858_v59 }
 0xb95   :  { %920 = vrot.lane.b32.xlu2 %v875_v17, %s1781_s18 }
 0xbef   :  { %v921_v18 = vpop.permute.xlu2 %920 }
 0xbf0   :  { %1463 = vmatmul.msk.f32.vlgmr.msrb.gmra.mxu1 %vm190_vm0, %v921_v18 }
 0xbf1   :  { %1234 = vmatpush.msrb.mxu1 %v1907_v10 }
 0xbf3   :  { %1235 = vmatpush.msrb.mxu1 %v1912_v13 }
 0xbf5   :  { %1236 = vmatpush.msrb.mxu1 %v1918_v14  ;;  %v991_v14 = vld [vmem:[#allocation4 + $0x28] sm:$0xff] }
 0xbf7   :  { %1237 = vmatpush.msrb.mxu1 %v1922_v15 }
 0xbff   :  { %v946_v19 = vpop.permute.xlu1 %945 }
 0xc00   :  { %1464 = vmatmul.msk.f32.vlgmr.msra.gmra.mxu2 %vm190_vm0, %v946_v19  ;;  %1465 = vmatmul.msk.f32.vlgmr.msra.gmra.mxu3 %vm190_vm0, %v946_v19 }
 0xc01   :  { %1306 = vmatpush.msra.mxu3 %v2062_v35  ;;  %1281 = vmatpush.msra.mxu2 %v2057_v33 }
 0xc03   :  { %1307 = vmatpush.msra.mxu3 %v2064_v36  ;;  %1282 = vmatpush.msra.mxu2 %v2059_v34 }
 0xc05   :  { %1308 = vmatpush.msra.mxu3 %v2072_v38  ;;  %1283 = vmatpush.msra.mxu2 %v2067_v37 }
 0xc07   :  { %1309 = vmatpush.msra.mxu3 %v2080_v40  ;;  %1284 = vmatpush.msra.mxu2 %v2075_v39 }
 0xc6d   :  { %v941_v10 = vpop.f32.mrf.mxu1 }
 0xc83   :  { %v966_v13 = vpop.f32.mrf.mxu2  ;;  %v1009_v15 = vpop.f32.mrf.mxu3 }
 0xc84   :  { %v967_v20 = vadd.f32 %v966_v13, %v941_v10  ;;  %v1012_v35 = vadd.f32 %v1009_v15, %v991_v14 }
 0xc86   :  { %v969_v33 = vadd.f32 %v2124_v44, %v967_v20  ;;  %v1013_v36 = vmul.f32 %v1012_v35, %v2040_v11 }
 0xc88   :  { %v970_v34 = vmul.f32 %v969_v33, %v2040_v11  ;;  %1531 = vtanh.f32 %v1013_v36  ;;  %v1221_v36 = vld [vmem:[#allocation4 + $0x38] sm:$0xff] }
 0xc8a   :  { %1533 = vtanh.f32 %v970_v34 }
 0xc8e   :  { %v1532_v38 = vpop.eup %1531 }
 0xc8f   :  { %v1015_v37 = vmul.f32 %v1532_v38, %v2040_v11 }
 0xc90   :  { %v1534_v40 = vpop.eup %1533 }
 0xc91   :  { %v1016_v39 = vadd.f32 %v1015_v37, %v2047_v24  ;;  %v972_v21 = vmul.f32 %v1534_v40, %v2040_v11 }
 0xc93   :  { %1019 = vrot.lane.b32.xlu1 %v1016_v39, %s1780_s10  ;;  %v973_v22 = vadd.f32 %v972_v21, %v2047_v24  ;;  %v1017_v32 = vmul.f32 %v1016_v39, %v912_v7 }
 0xc95   :  { %976 = vrot.lane.b32.xlu0 %v973_v22, %s1780_s10  ;;  %v974_v28 = vmul.f32 %v973_v22, %v869_v2 }
 0xd05   :  { %v1020_v23 = vpop.permute.xlu1 %1019 }
 0xd06   :  { %v1022_v25 = vmul.f32 %v1020_v23, %v1016_v39 }
 0xd07   :  { %v977_v26 = vpop.permute.xlu0 %976 }
 0xd08   :  { %v979_v27 = vmul.f32 %v977_v26, %v973_v22  ;;  %1024 = vrot.lane.b32.xlu0 %v1022_v25, %s1781_s18 }
 0xd0a   :  { %981 = vrot.lane.b32.xlu2 %v979_v27, %s1781_s18 }
 0xd64   :  { %v982_v29 = vpop.permute.xlu2 %981 }
 0xd65   :  { %v984_v30 = vadd.f32 %v982_v29, %v974_v28 }
 0xd67   :  { %1535 = vtanh.f32 %v984_v30 }
 0xd6d   :  { %v1536_v31 = vpop.eup %1535 }
 0xd6e   :  { %987 = vrot.lane.b32.xlu1 %v1536_v31, %s1780_s10 }
 0xd7a   :  { %v1025_v5 = vpop.permute.xlu0 %1024 }
 0xd7b   :  { %v1027_v41 = vadd.f32 %v1025_v5, %v1017_v32 }
 0xd7d   :  { %1537 = vtanh.f32 %v1027_v41 }
 0xd83   :  { %v1538_v42 = vpop.eup %1537 }
 0xd84   :  { %1030 = vrot.lane.b32.xlu2 %v1538_v42, %s1780_s10 }
 0xdde   :  { %v1031_v43 = vpop.permute.xlu2 %1030 }
 0xddf   :  { %v1033_v45 = vmul.f32 %v1031_v43, %v1016_v39 }
 0xde0   :  { %v988_v46 = vpop.permute.xlu1 %987 }
 0xde1   :  { %v990_v47 = vmul.f32 %v988_v46, %v973_v22  ;;  %1060 = vrot.lane.b32.xlu1 %v1033_v45, %s1781_s18 }
 0xde3   :  { %1035 = vrot.lane.b32.xlu0 %v990_v47, %s1781_s18 }
 0xe53   :  { %v1061_v48 = vpop.permute.xlu1 %1060 }
 0xe54   :  { %1467 = vmatmul.msk.f32.vlgmr.msra.gmra.mxu1 %vm190_vm0, %v1061_v48  ;;  %1468 = vmatmul.msk.f32.vlgmr.msrb.gmra.mxu2 %vm190_vm0, %v1061_v48 }
 0xe55   :  { %v1036_v49 = vpop.permute.xlu0 %1035 }
 0xe56   :  { %1466 = vmatmul.msk.f32.vlgmr.msra.gmra.mxu0 %vm190_vm0, %v1036_v49 }
 0xed1   :  { %v1081_v50 = vpop.f32.mrf.mxu1 }
 0xed3   :  { %v1056_v51 = vpop.f32.mrf.mxu0 }
 0xed4   :  { %v1082_v52 = vadd.f32 %v1081_v50, %v1056_v51 }
 0xed6   :  { %v1084_v53 = vadd.f32 %v2124_v44, %v1082_v52 }
 0xed7   :  { %v1124_v55 = vpop.f32.mrf.mxu2 }
 0xed8   :  { %v1085_v56 = vmul.f32 %v1084_v53, %v2040_v11  ;;  %v1127_v57 = vadd.f32 %v1124_v55, %v1106_v54 }
 0xeda   :  { %1539 = vtanh.f32 %v1085_v56  ;;  %v1128_v58 = vmul.f32 %v1127_v57, %v2040_v11 }
 0xedc   :  { %1541 = vtanh.f32 %v1128_v58 }
 0xee0   :  { %v1540_v59 = vpop.eup %1539 }
 0xee1   :  { %v1087_v60 = vmul.f32 %v1540_v59, %v2040_v11 }
 0xee2   :  { %v1542_v61 = vpop.eup %1541 }
 0xee3   :  { %v1088_v62 = vadd.f32 %v1087_v60, %v2047_v24  ;;  %v1130_v63 = vmul.f32 %v1542_v61, %v2040_v11 }
 0xee5   :  { %1091 = vrot.lane.b32.xlu2 %v1088_v62, %s1780_s10  ;;  %v1131_v0 = vadd.f32 %v1130_v63, %v2047_v24  ;;  %v1089_v6 = vmul.f32 %v1088_v62, %v984_v30  ;;  %v1493_v63 = vld [vmem:[%s2353_s22] ss:$0 sm:$0xff] }
 0xee7   :  { %1134 = vrot.lane.b32.xlu0 %v1131_v0, %s1780_s10  ;;  %v1132_v9 = vmul.f32 %v1131_v0, %v1027_v41 }
 0xf3f   :  { %v1092_v1 = vpop.permute.xlu2 %1091 }
 0xf40   :  { %v1094_v2 = vmul.f32 %v1092_v1, %v1088_v62 }
 0xf42   :  { %1096 = vrot.lane.b32.xlu1 %v1094_v2, %s1781_s18 }
 0xf59   :  { %v1135_v3 = vpop.permute.xlu0 %1134 }
 0xf5a   :  { %v1137_v4 = vmul.f32 %v1135_v3, %v1131_v0 }
 0xf5c   :  { %1139 = vrot.lane.b32.xlu2 %v1137_v4, %s1781_s18 }
 0xfb4   :  { %v1097_v7 = vpop.permute.xlu1 %1096 }
 0xfb5   :  { %v1099_v8 = vadd.f32 %v1097_v7, %v1089_v6 }
 0xfb6   :  { %v1140_v12 = vpop.permute.xlu2 %1139 }
 0xfb7   :  { %1543 = vtanh.f32 %v1099_v8  ;;  %v1142_v16 = vadd.f32 %v1140_v12, %v1132_v9  ;;  %v1494_v12 = vld [vmem:[#allocation5] ss:$0 sm:$0xff] }
 0xfb9   :  { %1545 = vtanh.f32 %v1142_v16 }
 0xfbd   :  { %v1544_v17 = vpop.eup %1543 }
 0xfbe   :  { %1102 = vrot.lane.b32.xlu0 %v1544_v17, %s1780_s10 }
 0xfbf   :  { %v1546_v18 = vpop.eup %1545 }
 0xfc0   :  { %1145 = vrot.lane.b32.xlu1 %v1546_v18, %s1780_s10 }
0x1030   :  { %v1103_v19 = vpop.permute.xlu0 %1102 }
0x1031   :  { %v1105_v10 = vmul.f32 %v1103_v19, %v1088_v62 }
0x1032   :  { %v1146_v13 = vpop.permute.xlu1 %1145 }
0x1033   :  { %v1148_v14 = vmul.f32 %v1146_v13, %v1131_v0  ;;  %1150 = vrot.lane.b32.xlu2 %v1105_v10, %s1781_s18 }
0x1035   :  { %1175 = vrot.lane.b32.xlu0 %v1148_v14, %s1781_s18 }
0x108d   :  { %v1151_v15 = vpop.permute.xlu2 %1150 }
0x108e   :  { %1469 = vmatmul.msk.f32.vlgmr.msrb.gmra.mxu3 %vm190_vm0, %v1151_v15 }
0x10a7   :  { %v1176_v20 = vpop.permute.xlu0 %1175 }
0x10a8   :  { %1470 = vmatmul.msk.f32.vlgmr.msrb.gmra.mxu0 %vm190_vm0, %v1176_v20  ;;  %1471 = vmatmul.msk.f32.vlgmr.msrb.gmra.mxu1 %vm190_vm0, %v1176_v20 }
0x1111   :  { %v1171_v35 = vpop.f32.mrf.mxu3 }
0x1125   :  { %v1196_v33 = vpop.f32.mrf.mxu0  ;;  %v1239_v34 = vpop.f32.mrf.mxu1 }
0x1126   :  { %v1197_v38 = vadd.f32 %v1196_v33, %v1171_v35  ;;  %v1242_v37 = vadd.f32 %v1239_v34, %v1221_v36 }
0x1128   :  { %v1199_v40 = vadd.f32 %v2124_v44, %v1197_v38  ;;  %v1243_v39 = vmul.f32 %v1242_v37, %v2040_v11 }
0x112a   :  { %v1200_v21 = vmul.f32 %v1199_v40, %v2040_v11  ;;  %1547 = vtanh.f32 %v1243_v39 }
0x112c   :  { %1549 = vtanh.f32 %v1200_v21 }
0x1130   :  { %v1548_v22 = vpop.eup %1547 }
0x1131   :  { %v1245_v23 = vmul.f32 %v1548_v22, %v2040_v11 }
0x1132   :  { %v1550_v25 = vpop.eup %1549 }
0x1133   :  { %v1246_v26 = vadd.f32 %v1245_v23, %v2047_v24  ;;  %v1202_v27 = vmul.f32 %v1550_v25, %v2040_v11 }
0x1135   :  { %1249 = vrot.lane.b32.xlu2 %v1246_v26, %s1780_s10  ;;  %v1203_v28 = vadd.f32 %v1202_v27, %v2047_v24  ;;  %v1247_v5 = vmul.f32 %v1246_v26, %v1142_v16 }
0x1137   :  { %1206 = vrot.lane.b32.xlu1 %v1203_v28, %s1780_s10  ;;  %v1204_v45 = vmul.f32 %v1203_v28, %v1099_v8 }
0x118f   :  { %v1250_v29 = vpop.permute.xlu2 %1249 }
0x1190   :  { %v1252_v30 = vmul.f32 %v1250_v29, %v1246_v26 }
0x1192   :  { %1254 = vrot.lane.b32.xlu1 %v1252_v30, %s1781_s18 }
0x11a9   :  { %v1207_v31 = vpop.permute.xlu1 %1206 }
0x11aa   :  { %v1209_v32 = vmul.f32 %v1207_v31, %v1203_v28 }
0x11ac   :  { %1211 = vrot.lane.b32.xlu0 %v1209_v32, %s1781_s18 }
0x1204   :  { %v1255_v41 = vpop.permute.xlu1 %1254 }
0x1205   :  { %v1257_v42 = vadd.f32 %v1255_v41, %v1247_v5 }
0x1207   :  { %1551 = vtanh.f32 %v1257_v42 }
0x120d   :  { %v1552_v43 = vpop.eup %1551 }
0x120e   :  { %1260 = vrot.lane.b32.xlu0 %v1552_v43, %s1780_s10 }
0x121e   :  { %v1212_v46 = vpop.permute.xlu0 %1211 }
0x121f   :  { %v1214_v47 = vadd.f32 %v1212_v46, %v1204_v45 }
0x1221   :  { %1553 = vtanh.f32 %v1214_v47 }
0x1227   :  { %v1554_v48 = vpop.eup %1553 }
0x1228   :  { %1217 = vrot.lane.b32.xlu2 %v1554_v48, %s1780_s10 }
0x1280   :  { %v1261_v49 = vpop.permute.xlu0 %1260 }
0x1281   :  { %v1263_v50 = vmul.f32 %v1261_v49, %v1246_v26 }
0x1282   :  { %v1218_v51 = vpop.permute.xlu2 %1217 }
0x1283   :  { %v1220_v52 = vmul.f32 %v1218_v51, %v1203_v28  ;;  %1290 = vrot.lane.b32.xlu2 %v1263_v50, %s1781_s18 }
0x1285   :  { %1265 = vrot.lane.b32.xlu1 %v1220_v52, %s1781_s18 }
0x12dd   :  { %v1291_v53 = vpop.permute.xlu2 %1290 }
0x12de   :  { %1473 = vmatmul.msk.f32.vlgmr.msra.gmra.mxu3 %vm190_vm0, %v1291_v53 }
0x12f7   :  { %v1266_v54 = vpop.permute.xlu1 %1265 }
0x12f8   :  { %1472 = vmatmul.msk.f32.vlgmr.msra.gmra.mxu2 %vm190_vm0, %v1266_v54 }
0x1361   :  { %v1311_v55 = vpop.f32.mrf.mxu3 }
0x137b   :  { %v1286_v56 = vpop.f32.mrf.mxu2 }
0x137c   :  { %v1312_v57 = vadd.f32 %v1311_v55, %v1286_v56 }
0x137e   :  { %v1314_v58 = vadd.f32 %v2124_v44, %v1312_v57 }
0x1380   :  { %v1315_v59 = vmul.f32 %v1314_v58, %v2040_v11 }
0x1382   :  { %1555 = vtanh.f32 %v1315_v59 }
0x1388   :  { %v1556_v60 = vpop.eup %1555 }
0x1389   :  { %v1317_v61 = vmul.f32 %v1556_v60, %v2040_v11 }
0x138b   :  { %v1318_v62 = vadd.f32 %v1317_v61, %v2047_v24 }
0x138d   :  { %1321 = vrot.lane.b32.xlu0 %v1318_v62, %s1780_s10  ;;  %v1319_v44 = vmul.f32 %v1318_v62, %v1214_v47 }
0x1395   :  { %1339 = vrot.lane.b32.xlu0 %v1493_v63, %s1782_s30 }
0x13ff   :  { %v1322_v0 = vpop.permute.xlu0 %1321 }
0x1400   :  { %v1324_v1 = vmul.f32 %v1322_v0, %v1318_v62 }
0x1402   :  { %1326 = vrot.lane.b32.xlu1 %v1324_v1, %s1781_s18 }
0x1407   :  { %v1340_v24 = vpop.permute.xlu0 %1339 }
0x1474   :  { %v1327_v2 = vpop.permute.xlu1 %1326 }
0x1475   :  { %v1329_v3 = vadd.f32 %v1327_v2, %v1319_v44 }
0x1477   :  { %1557 = vtanh.f32 %v1329_v3 }
0x147d   :  { %v1558_v4 = vpop.eup %1557 }
0x147e   :  { %1332 = vrot.lane.b32.xlu2 %v1558_v4, %s1780_s10 }
0x14d8   :  { %v1333_v11 = vpop.permute.xlu2 %1332 }
0x14d9   :  { %v1335_v6 = vmul.f32 %v1333_v11, %v1318_v62 }
0x14db   :  { %v1342_v7 = vmul.f32 %v1340_v24, %v1335_v6 }
0x14dd   :  { %1344 = vrot.lane.b32.xlu1 %v1342_v7, %s1781_s18 }
0x154f   :  { %v1345_v8 = vpop.permute.xlu1 %1344 }
0x1550   :  { %v1347_v9 = vsel %vm190_vm0, %v1345_v8, 0.0 }
0x1551   :  { %1348 = vadd.xlane.f32.xlu2 %v1347_v9 }
0x15c4   :  { %v1349_v16 = vpop.xlane.xlu2 %1348 }
0x15c5   :  { %v1354_v17 = vadd.f32 %v1494_v12, %v1349_v16 }
0x15c7   :  { %v1474_v18 = vmul.f32 -1.442695, %v1354_v17 }
0x15c9   :  { %1559 = vpow2.f32 %v1474_v18 }
0x15cf   :  { %v1560_v19 = vpop.eup %1559 }
0x15d0   :  { %v1358_v10 = vadd.f32 1.0, %v1560_v19 }
0x15d2   :  { %1561 = vrcp.f32 %v1358_v10  ;;  %v1370_v20 = vand.u32 2147483648, %v1358_v10  ;;  %v1368_v33 = vand.u32 2147483647, %v1358_v10  ;;  %vm1364_vm5 = vweird.f32 %v1358_v10 }
0x15d4   :  { %v1371_v34 = vor.u32 1.1754944e-38, %v1370_v20  ;;  %vm1369_vm8 = vcmp.eq.f32.partialorder %v1368_v33, 8.507059e+37 }
0x15d8   :  { %v1562_v13 = vpop.eup %1561 }
0x15d9   :  { %v1360_v14 = vmul.f32 %v1562_v13, %v1358_v10  ;;  %vm1365_vm4 = vweird.f32 %v1562_v13 }
0x15da   :  { %vm1366_vm7 = vmor %vm1364_vm5, %vm1365_vm4 }
0x15db   :  { %v1361_v15 = vsub.f32 1.0, %v1360_v14 }
0x15dd   :  { %v1362_v35 = vmul.f32 %v1562_v13, %v1361_v15 }
0x15df   :  { %v1363_v36 = vadd.f32 %v1562_v13, %v1362_v35 }
0x15e1   :  { %v1367_v38 = vsel %vm1366_vm7, %v1562_v13, %v1363_v36 }
0x15e2   :  { %v1372_v37 = vsel %vm1369_vm8, %v1371_v34, %v1367_v38 }
0x15e3   :  { %1375 = vst.msk [vmem:[%s2354_s14] sm:$0xff] %vm1374_vm6, %v1372_v37 }
0x15e4   :  { %1380 = vsyncpa [#allocation7], 1 }
0x15e5   :  { %1381 = vsyncpa [#allocation13], 1 }
0x15e6   :  { %1382 = vsyncpa [#allocation16], 1 }
0x15e7   :  { %1383 = vsyncpa [#allocation19], 1 }
0x15e8   :  { %1384 = vsyncpa [#allocation8], 1 }
0x15e9   :  { %1385 = vsyncpa [#allocation9], 1 }

</bundles_post_ra>
